<compile_context>
chip_gen: v7x
topology: tpu7x:2x2x1
jax: 0.10.0
libtpu: 0.0.40
codegen_flags: <defaults>
</compile_context>

<pallas_src>
import math
from functools import partial

import jax
import jax.numpy as jnp
from jax.experimental import pallas as pl
from jax.experimental.pallas import tpu as pltpu


def _round_up(x, m):
    return (x + m - 1) // m * m


# ------------------------------------------------------------------
# Pallas kernels
# ------------------------------------------------------------------
def _linear_kernel(x_ref, w_ref, b_ref, o_ref):
    acc = jnp.dot(x_ref[...], w_ref[...], preferred_element_type=jnp.float32)
    o_ref[...] = (acc + b_ref[...]).astype(o_ref.dtype)


def _linear_gelu_kernel(x_ref, w_ref, b_ref, o_ref):
    y = jnp.dot(x_ref[...], w_ref[...], preferred_element_type=jnp.float32)
    y = y + b_ref[...]
    # exact (erf-based) GELU in f32, matching PyTorch activation='gelu'
    g = 0.5 * y * (1.0 + jax.lax.erf(y * (1.0 / math.sqrt(2.0))))
    o_ref[...] = g.astype(o_ref.dtype)


def _add_layernorm_kernel(a_ref, r_ref, g_ref, b_ref, o_ref):
    # fused residual add + LayerNorm (eps=1e-5, PyTorch default), all f32
    x = a_ref[...] + r_ref[...]
    mean = jnp.mean(x, axis=-1, keepdims=True)
    var = jnp.mean(jnp.square(x - mean), axis=-1, keepdims=True)
    o_ref[...] = (x - mean) * jax.lax.rsqrt(var + 1e-5) * g_ref[...] + b_ref[...]


# ------------------------------------------------------------------
# pallas_call wrappers
# ------------------------------------------------------------------
def pallas_linear(x, w_bf16, b, activation=None, out_dtype=jnp.float32):
    """y = x @ w + b.  x: (M, K), w_bf16: (K, N) bf16, b: (1, N) f32."""
    M, K = x.shape
    N = w_bf16.shape[1]
    x = x.astype(jnp.bfloat16)
    b = b.astype(jnp.float32)

    # large row tile (amortizes per-grid-step overhead, feeds full MXU rows)
    tm = min(512, _round_up(M, 8))
    M_p = _round_up(M, tm)
    if M_p != M:
        x = jnp.pad(x, ((0, M_p - M), (0, 0)))

    # tile N only when it is a large multiple of 128 (bounds weight-block VMEM)
    if N % 512 == 0 and N > 512:
        tn = 512
    elif N % 256 == 0 and N > 256:
        tn = 256
    elif N % 128 == 0 and N > 128:
        tn = 128
    else:
        tn = N

    kernel = _linear_gelu_kernel if activation == "gelu" else _linear_kernel
    out = pl.pallas_call(
        kernel,
        out_shape=jax.ShapeDtypeStruct((M_p, N), out_dtype),
        grid=(M_p // tm, N // tn),
        in_specs=[
            pl.BlockSpec((tm, K), lambda i, j: (i, 0)),
            pl.BlockSpec((K, tn), lambda i, j: (0, j)),
            pl.BlockSpec((1, tn), lambda i, j: (0, j)),
        ],
        out_specs=pl.BlockSpec((tm, tn), lambda i, j: (i, j)),
        compiler_params=pltpu.CompilerParams(
            dimension_semantics=("parallel", "parallel")
        ),
    )(x, w_bf16, b)
    return out[:M] if M_p != M else out


def pallas_add_layernorm(x, r, gamma, beta):
    """LayerNorm(x + r).  x, r: (M, D) f32; gamma/beta: (1, D) f32."""
    M, D = x.shape
    x = x.astype(jnp.float32)
    r = r.astype(jnp.float32)
    tm = min(512, _round_up(M, 8))
    M_p = _round_up(M, tm)
    if M_p != M:
        x = jnp.pad(x, ((0, M_p - M), (0, 0)))
        r = jnp.pad(r, ((0, M_p - M), (0, 0)))
    out = pl.pallas_call(
        _add_layernorm_kernel,
        out_shape=jax.ShapeDtypeStruct((M_p, D), jnp.float32),
        grid=(M_p // tm,),
        in_specs=[
            pl.BlockSpec((tm, D), lambda i: (i, 0)),
            pl.BlockSpec((tm, D), lambda i: (i, 0)),
            pl.BlockSpec((1, D), lambda i: (0, 0)),
            pl.BlockSpec((1, D), lambda i: (0, 0)),
        ],
        out_specs=pl.BlockSpec((tm, D), lambda i: (i, 0)),
        compiler_params=pltpu.CompilerParams(dimension_semantics=("parallel",)),
    )(x, r, gamma, beta)
    return out[:M] if M_p != M else out


def pallas_attention(qkv, mask_add, nhead):
    """Multi-head self-attention.

    qkv: (B, S, 3*D) bf16 fused projection (q | k | v column groups, heads
         contiguous within each group — same layout PyTorch's in_proj makes).
    mask_add: (B, 1, S) f32 additive key-padding mask (-1e9 at padded keys).
    Returns (B, S, D) f32 with head h occupying columns [h*dh, (h+1)*dh).
    """
    B, S, D3 = qkv.shape
    D = D3 // 3
    dh = D // nhead
    scale = 1.0 / math.sqrt(dh)
    trans_b_dims = (((1,), (1,)), ((), ()))  # q @ k^T without explicit transpose

    def kernel(qkv_ref, m_ref, o_ref):
        blk = qkv_ref[0]          # (S, 3D) bf16
        mask = m_ref[0]           # (1, S)  f32
        outs = []
        for h in range(nhead):
            q = blk[:, h * dh:(h + 1) * dh]
            k = blk[:, D + h * dh: D + (h + 1) * dh]
            v = blk[:, 2 * D + h * dh: 2 * D + (h + 1) * dh]
            s = jax.lax.dot_general(
                q, k, trans_b_dims, preferred_element_type=jnp.float32
            )
            s = s * scale + mask
            s = s - jnp.max(s, axis=-1, keepdims=True)
            p = jnp.exp(s)
            p = p * pl.reciprocal(jnp.sum(p, axis=-1, keepdims=True), approx=True)
            outs.append(
                jnp.dot(p.astype(v.dtype), v, preferred_element_type=jnp.float32)
            )
        # single lane-dense (S, D) store per grid step
        o_ref[0] = jnp.concatenate(outs, axis=-1).astype(o_ref.dtype)

    return pl.pallas_call(
        kernel,
        out_shape=jax.ShapeDtypeStruct((B, S, D), jnp.float32),
        grid=(B,),
        in_specs=[
            pl.BlockSpec((1, S, D3), lambda b: (b, 0, 0)),
            pl.BlockSpec((1, 1, S), lambda b: (b, 0, 0)),
        ],
        out_specs=pl.BlockSpec((1, S, D), lambda b: (b, 0, 0)),
        compiler_params=pltpu.CompilerParams(dimension_semantics=("parallel",)),
    )(qkv, mask_add)


# ------------------------------------------------------------------
# Transformer encoder layer (PyTorch post-norm semantics, dropout=0)
# ------------------------------------------------------------------
def encoder_layer(x, mask_add, lp, nhead):
    B, S, D = x.shape
    xf = x.reshape(B * S, D)  # f32 residual stream

    # --- self-attention block ---
    qkv = pallas_linear(
        xf, lp["in_proj_w_t"], lp["in_proj_b"], out_dtype=jnp.bfloat16
    )  # (B*S, 3D) bf16
    attn = pallas_attention(qkv.reshape(B, S, 3 * D), mask_add, nhead)  # (B,S,D)
    attn = pallas_linear(
        attn.reshape(B * S, D), lp["out_proj_w_t"], lp["out_proj_b"],
        out_dtype=jnp.float32,
    )
    x1 = pallas_add_layernorm(xf, attn, lp["ln1_g"], lp["ln1_b"])

    # --- feed-forward block (GELU fused into the first linear kernel) ---
    ff = pallas_linear(
        x1, lp["ff_w1_t"], lp["ff_b1"], activation="gelu", out_dtype=jnp.bfloat16
    )
    ff = pallas_linear(ff, lp["ff_w2_t"], lp["ff_b2"], out_dtype=jnp.float32)
    x2 = pallas_add_layernorm(x1, ff, lp["ln2_g"], lp["ln2_b"])
    return x2.reshape(B, S, D)


# ------------------------------------------------------------------
# Full SMILES_BERT forward
# ------------------------------------------------------------------
@partial(jax.jit, static_argnames=("nhead",))
def smiles_bert_forward(params, src, pos_num, adj_mask, adj_mat, *, nhead):
    # Smiles_embedding: token + position (+ adjacency), f32
    # TODO(synk): embedding gathers stay as jnp indexing (no dedicated kernel).
    x = params["token_emb"][src] + params["pos_emb"][pos_num]

    if adj_mat is not None:
        # Adjacency_embedding: out[b,d] = sum_l wa[l] * (adj[b] @ wh)[l,d] + bias
        # reassociated as (wa^T adj[b]) @ wh -> one batched MXU matmul
        v = jnp.einsum("blm,l->bm", adj_mat, params["adj_wa"])       # (B, L)
        adj_out = pallas_linear(
            v, params["adj_wh_t"], params["adj_bias"], out_dtype=jnp.float32
        )                                                            # (B, D)
        # .repeat(1, max_len).reshape(-1, max_len, D) == broadcast over seq axis
        x = x + adj_mask[:, :, None] * adj_out[:, None, :]

    # additive key-padding mask: large finite negative (avoids -inf - -inf NaNs)
    mask_add = jnp.where(src == 0, -1e9, 0.0).astype(jnp.float32)[:, None, :]

    for lp in params["layers"]:
        x = encoder_layer(x, mask_add, lp, nhead)
    return x


# ------------------------------------------------------------------
# Deterministic parameter initialization (synthetic, PyTorch-like scales).
# Weights are stored pre-transposed (in, out) and pre-cast to bf16 so the
# matmul kernels get MXU-native inputs without per-call conversion.
# ------------------------------------------------------------------
def init_params(key, vocab_size, max_len, D, nhead, FF, nlayers):
    def uniform(k, shape, scale):
        return jax.random.uniform(k, shape, jnp.float32, -scale, scale)

    keys = jax.random.split(key, 5 + nlayers)
    token_emb = 0.02 * jax.random.normal(keys[0], (vocab_size, D), jnp.float32)
    token_emb = token_emb.at[0].set(0.0)  # padding_idx=0 row is zero
    pos_emb = 0.02 * jax.random.normal(keys[1], (max_len, D), jnp.float32)

    stdv = 1.0 / math.sqrt(D)
    stdv2 = 1.0 / math.sqrt(max_len)
    adj_wh = uniform(keys[2], (max_len, D), stdv)
    adj_wa = uniform(keys[3], (max_len,), stdv2)
    adj_bias = uniform(keys[4], (1, D), stdv)

    layers = []
    for li in range(nlayers):
        lk = jax.random.split(keys[5 + li], 8)
        s_d = 1.0 / math.sqrt(D)
        s_ff = 1.0 / math.sqrt(FF)
        in_proj_w = uniform(lk[0], (3 * D, D), s_d)    # PyTorch (out, in)
        out_proj_w = uniform(lk[2], (D, D), s_d)
        ff_w1 = uniform(lk[4], (FF, D), s_d)
        ff_w2 = uniform(lk[6], (D, FF), s_ff)
        layers.append(
            dict(
                in_proj_w_t=in_proj_w.T.astype(jnp.bfloat16),
                in_proj_b=uniform(lk[1], (1, 3 * D), s_d),
                out_proj_w_t=out_proj_w.T.astype(jnp.bfloat16),
                out_proj_b=uniform(lk[3], (1, D), s_d),
                ln1_g=jnp.ones((1, D), jnp.float32),
                ln1_b=jnp.zeros((1, D), jnp.float32),
                ff_w1_t=ff_w1.T.astype(jnp.bfloat16),
                ff_b1=uniform(lk[5], (1, FF), s_d),
                ff_w2_t=ff_w2.T.astype(jnp.bfloat16),
                ff_b2=uniform(lk[7], (1, D), s_ff),
                ln2_g=jnp.ones((1, D), jnp.float32),
                ln2_b=jnp.zeros((1, D), jnp.float32),
            )
        )

    return dict(
        token_emb=token_emb,
        pos_emb=pos_emb,
        adj_wh_t=adj_wh.astype(jnp.bfloat16),
        adj_wa=adj_wa,
        adj_bias=adj_bias,
        layers=layers,
    )


# ------------------------------------------------------------------
if __name__ == "__main__":
    # small shapes: vocab=16, max_len=seq=8, feature_dim=32, nhead=4, ff=64, 2 layers
    vocab_size, max_len, D, nhead, FF, nlayers = 16, 8, 32, 4, 64, 2
    B, S = 2, max_len

    key = jax.random.PRNGKey(0)
    kp, k1, k2 = jax.random.split(key, 3)
    params = init_params(kp, vocab_size, max_len, D, nhead, FF, nlayers)

    src = jax.random.randint(k1, (B, S), 1, vocab_size)
    src = src.at[:, -2:].set(0)  # trailing padding tokens (id 0)
    pos_num = jnp.broadcast_to(jnp.arange(S, dtype=jnp.int32), (B, S))
    adj_mask = (src != 0).astype(jnp.float32)
    adj_mat = jax.random.uniform(k2, (B, S, S), jnp.float32)

    out = smiles_bert_forward(params, src, pos_num, adj_mask, adj_mat, nhead=nhead)
    out = jax.block_until_ready(out)
    assert out.shape == (B, S, D) and out.dtype == jnp.float32
    assert bool(jnp.all(jnp.isfinite(out)))
    print("KERNEL_OK")
</pallas_src>

<mosaic_0001>
module attributes {stable_mosaic.version = 11 : i64} {
  func.func @_linear_kernel(%arg0: i32, %arg1: i32, %arg2: memref<8x8xbf16, #tpu.memory_space<vmem>>, %arg3: memref<8x32xbf16, #tpu.memory_space<vmem>>, %arg4: memref<1x32xf32, #tpu.memory_space<vmem>>, %arg5: memref<8x32xf32, #tpu.memory_space<vmem>>) attributes {dimension_semantics = [#tpu.dimension_semantics<parallel>, #tpu.dimension_semantics<parallel>], iteration_bounds = array<i64: 1, 1>, scalar_prefetch = 0 : i64, scratch_operands = 0 : i64, tpu.core_type = #tpu.core_type<tc>, window_params = [{transform_indices = @transform_0, window_bounds = array<i64: 8, 8>}, {transform_indices = @transform_1, window_bounds = array<i64: 8, 32>}, {transform_indices = @transform_2, window_bounds = array<i64: 1, 32>}, {transform_indices = @transform_3, window_bounds = array<i64: 8, 32>}]} {
    %c0 = arith.constant 0 : index
    %c0_0 = arith.constant 0 : index
    %0 = vector.load %arg2[%c0, %c0_0] : memref<8x8xbf16, #tpu.memory_space<vmem>>, vector<8x8xbf16>
    %c0_1 = arith.constant 0 : index
    %c0_2 = arith.constant 0 : index
    %1 = vector.load %arg3[%c0_1, %c0_2] : memref<8x32xbf16, #tpu.memory_space<vmem>>, vector<8x32xbf16>
    %cst = arith.constant dense<0.000000e+00> : vector<8x32xf32>
    %2 = tpu.matmul %0, %1, %cst {dimension_numbers = #tpu.dot_dimension_numbers<[1], [0], [0], [1], [0, 0, 1, 1], [], []>} : vector<8x8xbf16>, vector<8x32xbf16>, vector<8x32xf32> -> vector<8x32xf32>
    %c0_3 = arith.constant 0 : index
    %c0_4 = arith.constant 0 : index
    %3 = vector.load %arg4[%c0_3, %c0_4] : memref<1x32xf32, #tpu.memory_space<vmem>>, vector<1x32xf32>
    %4 = vector.broadcast %3 : vector<1x32xf32> to vector<8x32xf32>
    %5 = arith.addf %2, %4 : vector<8x32xf32>
    %c0_5 = arith.constant 0 : index
    %c0_6 = arith.constant 0 : index
    %6 = vector.load %arg5[%c0_5, %c0_6] : memref<8x32xf32, #tpu.memory_space<vmem>>, vector<8x32xf32>
    tpu.vector_store %arg5[%c0_5, %c0_6], %5 {strides = array<i32>} : memref<8x32xf32, #tpu.memory_space<vmem>>, vector<8x32xf32>,
    return
  }
  func.func @transform_0(%arg0: i32, %arg1: i32) -> (i32, i32) {
    %c0_i32 = arith.constant 0 : i32
    %c0_i32_0 = arith.constant 0 : i32
    return %arg0, %c0_i32 : i32, i32
  }
  func.func @transform_1(%arg0: i32, %arg1: i32) -> (i32, i32) {
    %c0_i32 = arith.constant 0 : i32
    %c0_i32_0 = arith.constant 0 : i32
    return %c0_i32, %arg1 : i32, i32
  }
  func.func @transform_2(%arg0: i32, %arg1: i32) -> (i32, i32) {
    %c0_i32 = arith.constant 0 : i32
    %c0_i32_0 = arith.constant 0 : i32
    return %c0_i32, %arg1 : i32, i32
  }
  func.func @transform_3(%arg0: i32, %arg1: i32) -> (i32, i32) {
    %c0_i32 = arith.constant 0 : i32
    return %arg0, %arg1 : i32, i32
  }
}

module attributes {stable_mosaic.version = 11 : i64} {
  func.func @_linear_kernel(%arg0: i32, %arg1: i32, %arg2: memref<16x32xbf16, #tpu.memory_space<vmem>>, %arg3: memref<32x96xbf16, #tpu.memory_space<vmem>>, %arg4: memref<1x96xf32, #tpu.memory_space<vmem>>, %arg5: memref<16x96xbf16, #tpu.memory_space<vmem>>) attributes {dimension_semantics = [#tpu.dimension_semantics<parallel>, #tpu.dimension_semantics<parallel>], iteration_bounds = array<i64: 1, 1>, scalar_prefetch = 0 : i64, scratch_operands = 0 : i64, tpu.core_type = #tpu.core_type<tc>, window_params = [{transform_indices = @transform_0, window_bounds = array<i64: 16, 32>}, {transform_indices = @transform_1, window_bounds = array<i64: 32, 96>}, {transform_indices = @transform_2, window_bounds = array<i64: 1, 96>}, {transform_indices = @transform_3, window_bounds = array<i64: 16, 96>}]} {
    %c0 = arith.constant 0 : index
    %c0_0 = arith.constant 0 : index
    %0 = vector.load %arg2[%c0, %c0_0] : memref<16x32xbf16, #tpu.memory_space<vmem>>, vector<16x32xbf16>
    %c0_1 = arith.constant 0 : index
    %c0_2 = arith.constant 0 : index
    %1 = vector.load %arg3[%c0_1, %c0_2] : memref<32x96xbf16, #tpu.memory_space<vmem>>, vector<32x96xbf16>
    %cst = arith.constant dense<0.000000e+00> : vector<16x96xf32>
    %2 = tpu.matmul %0, %1, %cst {dimension_numbers = #tpu.dot_dimension_numbers<[1], [0], [0], [1], [0, 0, 1, 1], [], []>} : vector<16x32xbf16>, vector<32x96xbf16>, vector<16x96xf32> -> vector<16x96xf32>
    %c0_3 = arith.constant 0 : index
    %c0_4 = arith.constant 0 : index
    %3 = vector.load %arg4[%c0_3, %c0_4] : memref<1x96xf32, #tpu.memory_space<vmem>>, vector<1x96xf32>
    %4 = vector.broadcast %3 : vector<1x96xf32> to vector<16x96xf32>
    %5 = arith.addf %2, %4 : vector<16x96xf32>
    %6 = arith.truncf %5 : vector<16x96xf32> to vector<16x96xbf16>
    %c0_5 = arith.constant 0 : index
    %c0_6 = arith.constant 0 : index
    %7 = vector.load %arg5[%c0_5, %c0_6] : memref<16x96xbf16, #tpu.memory_space<vmem>>, vector<16x96xbf16>
    tpu.vector_store %arg5[%c0_5, %c0_6], %6 {strides = array<i32>} : memref<16x96xbf16, #tpu.memory_space<vmem>>, vector<16x96xbf16>,
    return
  }
  func.func @transform_0(%arg0: i32, %arg1: i32) -> (i32, i32) {
    %c0_i32 = arith.constant 0 : i32
    %c0_i32_0 = arith.constant 0 : i32
    return %arg0, %c0_i32 : i32, i32
  }
  func.func @transform_1(%arg0: i32, %arg1: i32) -> (i32, i32) {
    %c0_i32 = arith.constant 0 : i32
    %c0_i32_0 = arith.constant 0 : i32
    return %c0_i32, %arg1 : i32, i32
  }
  func.func @transform_2(%arg0: i32, %arg1: i32) -> (i32, i32) {
    %c0_i32 = arith.constant 0 : i32
    %c0_i32_0 = arith.constant 0 : i32
    return %c0_i32, %arg1 : i32, i32
  }
  func.func @transform_3(%arg0: i32, %arg1: i32) -> (i32, i32) {
    %c0_i32 = arith.constant 0 : i32
    return %arg0, %arg1 : i32, i32
  }
}

module attributes {stable_mosaic.version = 11 : i64} {
  func.func @kernel(%arg0: i32, %arg1: memref<1x8x96xbf16, #tpu.memory_space<vmem>>, %arg2: memref<1x1x8xf32, #tpu.memory_space<vmem>>, %arg3: memref<1x8x32xf32, #tpu.memory_space<vmem>>) attributes {dimension_semantics = [#tpu.dimension_semantics<parallel>], iteration_bounds = array<i64: 2>, scalar_prefetch = 0 : i64, scratch_operands = 0 : i64, tpu.core_type = #tpu.core_type<tc>, window_params = [{transform_indices = @transform_0, window_bounds = array<i64: 1, 8, 96>}, {transform_indices = @transform_1, window_bounds = array<i64: 1, 1, 8>}, {transform_indices = @transform_2, window_bounds = array<i64: 1, 8, 32>}]} {
    %c0 = arith.constant 0 : index
    %c0_0 = arith.constant 0 : index
    %c0_1 = arith.constant 0 : index
    %0 = vector.load %arg1[%c0, %c0_0, %c0_1] : memref<1x8x96xbf16, #tpu.memory_space<vmem>>, vector<1x8x96xbf16>
    %1 = vector.shape_cast %0 : vector<1x8x96xbf16> to vector<8x96xbf16>
    %c0_2 = arith.constant 0 : index
    %c0_3 = arith.constant 0 : index
    %c0_4 = arith.constant 0 : index
    %2 = vector.load %arg2[%c0_2, %c0_3, %c0_4] : memref<1x1x8xf32, #tpu.memory_space<vmem>>, vector<1x1x8xf32>
    %3 = vector.shape_cast %2 : vector<1x1x8xf32> to vector<1x8xf32>
    %4 = vector.extract_strided_slice %1 {offsets = [0, 0], sizes = [8, 8], strides = [1, 1]} : vector<8x96xbf16> to vector<8x8xbf16>
    %5 = vector.extract_strided_slice %1 {offsets = [0, 32], sizes = [8, 8], strides = [1, 1]} : vector<8x96xbf16> to vector<8x8xbf16>
    %6 = vector.extract_strided_slice %1 {offsets = [0, 64], sizes = [8, 8], strides = [1, 1]} : vector<8x96xbf16> to vector<8x8xbf16>
    %cst = arith.constant dense<0.000000e+00> : vector<8x8xf32>
    %7 = tpu.matmul %4, %5, %cst {dimension_numbers = #tpu.dot_dimension_numbers<[1], [1], [0], [0], [0, 0, 1, 0], [], []>} : vector<8x8xbf16>, vector<8x8xbf16>, vector<8x8xf32> -> vector<8x8xf32>
    %cst_5 = arith.constant 0.353553385 : f32
    %8 = vector.broadcast %cst_5 : f32 to vector<8x8xf32>
    %9 = arith.mulf %7, %8 : vector<8x8xf32>
    %10 = vector.broadcast %3 : vector<1x8xf32> to vector<8x8xf32>
    %11 = arith.addf %9, %10 : vector<8x8xf32>
    %cst_6 = arith.constant dense<0xFF800000> : vector<8xf32>
    %12 = vector.multi_reduction <maximumf>, %11, %cst_6 [1] : vector<8x8xf32> to vector<8xf32>
    %13 = vector.shape_cast %12 : vector<8xf32> to vector<8x1xf32>
    %14 = vector.broadcast %13 : vector<8x1xf32> to vector<8x8xf32>
    %15 = arith.subf %11, %14 : vector<8x8xf32>
    %16 = math.exp %15 : vector<8x8xf32>
    %cst_7 = arith.constant dense<0.000000e+00> : vector<8xf32>
    %17 = vector.multi_reduction <add>, %16, %cst_7 [1] : vector<8x8xf32> to vector<8xf32>
    %18 = vector.shape_cast %17 : vector<8xf32> to vector<8x1xf32>
    %19 = tpu.reciprocal %18 {approx = true} : vector<8x1xf32> -> vector<8x1xf32>
    %20 = vector.broadcast %19 : vector<8x1xf32> to vector<8x8xf32>
    %21 = arith.mulf %16, %20 : vector<8x8xf32>
    %22 = arith.truncf %21 : vector<8x8xf32> to vector<8x8xbf16>
    %cst_8 = arith.constant dense<0.000000e+00> : vector<8x8xf32>
    %23 = tpu.matmul %22, %6, %cst_8 {dimension_numbers = #tpu.dot_dimension_numbers<[1], [0], [0], [1], [0, 0, 1, 1], [], []>} : vector<8x8xbf16>, vector<8x8xbf16>, vector<8x8xf32> -> vector<8x8xf32>
    %24 = vector.extract_strided_slice %1 {offsets = [0, 8], sizes = [8, 8], strides = [1, 1]} : vector<8x96xbf16> to vector<8x8xbf16>
    %25 = vector.extract_strided_slice %1 {offsets = [0, 40], sizes = [8, 8], strides = [1, 1]} : vector<8x96xbf16> to vector<8x8xbf16>
    %26 = vector.extract_strided_slice %1 {offsets = [0, 72], sizes = [8, 8], strides = [1, 1]} : vector<8x96xbf16> to vector<8x8xbf16>
    %cst_9 = arith.constant dense<0.000000e+00> : vector<8x8xf32>
    %27 = tpu.matmul %24, %25, %cst_9 {dimension_numbers = #tpu.dot_dimension_numbers<[1], [1], [0], [0], [0, 0, 1, 0], [], []>} : vector<8x8xbf16>, vector<8x8xbf16>, vector<8x8xf32> -> vector<8x8xf32>
    %cst_10 = arith.constant 0.353553385 : f32
    %28 = vector.broadcast %cst_10 : f32 to vector<8x8xf32>
    %29 = arith.mulf %27, %28 : vector<8x8xf32>
    %30 = vector.broadcast %3 : vector<1x8xf32> to vector<8x8xf32>
    %31 = arith.addf %29, %30 : vector<8x8xf32>
    %cst_11 = arith.constant dense<0xFF800000> : vector<8xf32>
    %32 = vector.multi_reduction <maximumf>, %31, %cst_11 [1] : vector<8x8xf32> to vector<8xf32>
    %33 = vector.shape_cast %32 : vector<8xf32> to vector<8x1xf32>
    %34 = vector.broadcast %33 : vector<8x1xf32> to vector<8x8xf32>
    %35 = arith.subf %31, %34 : vector<8x8xf32>
    %36 = math.exp %35 : vector<8x8xf32>
    %cst_12 = arith.constant dense<0.000000e+00> : vector<8xf32>
    %37 = vector.multi_reduction <add>, %36, %cst_12 [1] : vector<8x8xf32> to vector<8xf32>
    %38 = vector.shape_cast %37 : vector<8xf32> to vector<8x1xf32>
    %39 = tpu.reciprocal %38 {approx = true} : vector<8x1xf32> -> vector<8x1xf32>
    %40 = vector.broadcast %39 : vector<8x1xf32> to vector<8x8xf32>
    %41 = arith.mulf %36, %40 : vector<8x8xf32>
    %42 = arith.truncf %41 : vector<8x8xf32> to vector<8x8xbf16>
    %cst_13 = arith.constant dense<0.000000e+00> : vector<8x8xf32>
    %43 = tpu.matmul %42, %26, %cst_13 {dimension_numbers = #tpu.dot_dimension_numbers<[1], [0], [0], [1], [0, 0, 1, 1], [], []>} : vector<8x8xbf16>, vector<8x8xbf16>, vector<8x8xf32> -> vector<8x8xf32>
    %44 = vector.extract_strided_slice %1 {offsets = [0, 16], sizes = [8, 8], strides = [1, 1]} : vector<8x96xbf16> to vector<8x8xbf16>
    %45 = vector.extract_strided_slice %1 {offsets = [0, 48], sizes = [8, 8], strides = [1, 1]} : vector<8x96xbf16> to vector<8x8xbf16>
    %46 = vector.extract_strided_slice %1 {offsets = [0, 80], sizes = [8, 8], strides = [1, 1]} : vector<8x96xbf16> to vector<8x8xbf16>
    %cst_14 = arith.constant dense<0.000000e+00> : vector<8x8xf32>
    %47 = tpu.matmul %44, %45, %cst_14 {dimension_numbers = #tpu.dot_dimension_numbers<[1], [1], [0], [0], [0, 0, 1, 0], [], []>} : vector<8x8xbf16>, vector<8x8xbf16>, vector<8x8xf32> -> vector<8x8xf32>
    %cst_15 = arith.constant 0.353553385 : f32
    %48 = vector.broadcast %cst_15 : f32 to vector<8x8xf32>
    %49 = arith.mulf %47, %48 : vector<8x8xf32>
    %50 = vector.broadcast %3 : vector<1x8xf32> to vector<8x8xf32>
    %51 = arith.addf %49, %50 : vector<8x8xf32>
    %cst_16 = arith.constant dense<0xFF800000> : vector<8xf32>
    %52 = vector.multi_reduction <maximumf>, %51, %cst_16 [1] : vector<8x8xf32> to vector<8xf32>
    %53 = vector.shape_cast %52 : vector<8xf32> to vector<8x1xf32>
    %54 = vector.broadcast %53 : vector<8x1xf32> to vector<8x8xf32>
    %55 = arith.subf %51, %54 : vector<8x8xf32>
    %56 = math.exp %55 : vector<8x8xf32>
    %cst_17 = arith.constant dense<0.000000e+00> : vector<8xf32>
    %57 = vector.multi_reduction <add>, %56, %cst_17 [1] : vector<8x8xf32> to vector<8xf32>
    %58 = vector.shape_cast %57 : vector<8xf32> to vector<8x1xf32>
    %59 = tpu.reciprocal %58 {approx = true} : vector<8x1xf32> -> vector<8x1xf32>
    %60 = vector.broadcast %59 : vector<8x1xf32> to vector<8x8xf32>
    %61 = arith.mulf %56, %60 : vector<8x8xf32>
    %62 = arith.truncf %61 : vector<8x8xf32> to vector<8x8xbf16>
    %cst_18 = arith.constant dense<0.000000e+00> : vector<8x8xf32>
    %63 = tpu.matmul %62, %46, %cst_18 {dimension_numbers = #tpu.dot_dimension_numbers<[1], [0], [0], [1], [0, 0, 1, 1], [], []>} : vector<8x8xbf16>, vector<8x8xbf16>, vector<8x8xf32> -> vector<8x8xf32>
    %64 = vector.extract_strided_slice %1 {offsets = [0, 24], sizes = [8, 8], strides = [1, 1]} : vector<8x96xbf16> to vector<8x8xbf16>
    %65 = vector.extract_strided_slice %1 {offsets = [0, 56], sizes = [8, 8], strides = [1, 1]} : vector<8x96xbf16> to vector<8x8xbf16>
    %66 = vector.extract_strided_slice %1 {offsets = [0, 88], sizes = [8, 8], strides = [1, 1]} : vector<8x96xbf16> to vector<8x8xbf16>
    %cst_19 = arith.constant dense<0.000000e+00> : vector<8x8xf32>
    %67 = tpu.matmul %64, %65, %cst_19 {dimension_numbers = #tpu.dot_dimension_numbers<[1], [1], [0], [0], [0, 0, 1, 0], [], []>} : vector<8x8xbf16>, vector<8x8xbf16>, vector<8x8xf32> -> vector<8x8xf32>
    %cst_20 = arith.constant 0.353553385 : f32
    %68 = vector.broadcast %cst_20 : f32 to vector<8x8xf32>
    %69 = arith.mulf %67, %68 : vector<8x8xf32>
    %70 = vector.broadcast %3 : vector<1x8xf32> to vector<8x8xf32>
    %71 = arith.addf %69, %70 : vector<8x8xf32>
    %cst_21 = arith.constant dense<0xFF800000> : vector<8xf32>
    %72 = vector.multi_reduction <maximumf>, %71, %cst_21 [1] : vector<8x8xf32> to vector<8xf32>
    %73 = vector.shape_cast %72 : vector<8xf32> to vector<8x1xf32>
    %74 = vector.broadcast %73 : vector<8x1xf32> to vector<8x8xf32>
    %75 = arith.subf %71, %74 : vector<8x8xf32>
    %76 = math.exp %75 : vector<8x8xf32>
    %cst_22 = arith.constant dense<0.000000e+00> : vector<8xf32>
    %77 = vector.multi_reduction <add>, %76, %cst_22 [1] : vector<8x8xf32> to vector<8xf32>
    %78 = vector.shape_cast %77 : vector<8xf32> to vector<8x1xf32>
    %79 = tpu.reciprocal %78 {approx = true} : vector<8x1xf32> -> vector<8x1xf32>
    %80 = vector.broadcast %79 : vector<8x1xf32> to vector<8x8xf32>
    %81 = arith.mulf %76, %80 : vector<8x8xf32>
    %82 = arith.truncf %81 : vector<8x8xf32> to vector<8x8xbf16>
    %cst_23 = arith.constant dense<0.000000e+00> : vector<8x8xf32>
    %83 = tpu.matmul %82, %66, %cst_23 {dimension_numbers = #tpu.dot_dimension_numbers<[1], [0], [0], [1], [0, 0, 1, 1], [], []>} : vector<8x8xbf16>, vector<8x8xbf16>, vector<8x8xf32> -> vector<8x8xf32>
    %84 = tpu.concatenate %23, %43, %63, %83 in 1 : vector<8x8xf32>, vector<8x8xf32>, vector<8x8xf32>, vector<8x8xf32> -> vector<8x32xf32>
    %c0_24 = arith.constant 0 : index
    %c0_25 = arith.constant 0 : index
    %c0_26 = arith.constant 0 : index
    %85 = vector.load %arg3[%c0_24, %c0_25, %c0_26] : memref<1x8x32xf32, #tpu.memory_space<vmem>>, vector<1x8x32xf32>
    %86 = vector.shape_cast %85 : vector<1x8x32xf32> to vector<8x32xf32>
    %87 = vector.shape_cast %84 : vector<8x32xf32> to vector<1x8x32xf32>
    tpu.vector_store %arg3[%c0_24, %c0_25, %c0_26], %87 {strides = array<i32>} : memref<1x8x32xf32, #tpu.memory_space<vmem>>, vector<1x8x32xf32>,
    return
  }
  func.func @transform_0(%arg0: i32) -> (i32, i32, i32) {
    %c0_i32 = arith.constant 0 : i32
    %c0_i32_0 = arith.constant 0 : i32
    %c0_i32_1 = arith.constant 0 : i32
    return %arg0, %c0_i32, %c0_i32_0 : i32, i32, i32
  }
  func.func @transform_1(%arg0: i32) -> (i32, i32, i32) {
    %c0_i32 = arith.constant 0 : i32
    %c0_i32_0 = arith.constant 0 : i32
    %c0_i32_1 = arith.constant 0 : i32
    return %arg0, %c0_i32, %c0_i32_0 : i32, i32, i32
  }
  func.func @transform_2(%arg0: i32) -> (i32, i32, i32) {
    %c0_i32 = arith.constant 0 : i32
    %c0_i32_0 = arith.constant 0 : i32
    %c0_i32_1 = arith.constant 0 : i32
    return %arg0, %c0_i32, %c0_i32_0 : i32, i32, i32
  }
}

module attributes {stable_mosaic.version = 11 : i64} {
  func.func @_linear_kernel(%arg0: i32, %arg1: i32, %arg2: memref<16x32xbf16, #tpu.memory_space<vmem>>, %arg3: memref<32x32xbf16, #tpu.memory_space<vmem>>, %arg4: memref<1x32xf32, #tpu.memory_space<vmem>>, %arg5: memref<16x32xf32, #tpu.memory_space<vmem>>) attributes {dimension_semantics = [#tpu.dimension_semantics<parallel>, #tpu.dimension_semantics<parallel>], iteration_bounds = array<i64: 1, 1>, scalar_prefetch = 0 : i64, scratch_operands = 0 : i64, tpu.core_type = #tpu.core_type<tc>, window_params = [{transform_indices = @transform_0, window_bounds = array<i64: 16, 32>}, {transform_indices = @transform_1, window_bounds = array<i64: 32, 32>}, {transform_indices = @transform_2, window_bounds = array<i64: 1, 32>}, {transform_indices = @transform_3, window_bounds = array<i64: 16, 32>}]} {
    %c0 = arith.constant 0 : index
    %c0_0 = arith.constant 0 : index
    %0 = vector.load %arg2[%c0, %c0_0] : memref<16x32xbf16, #tpu.memory_space<vmem>>, vector<16x32xbf16>
    %c0_1 = arith.constant 0 : index
    %c0_2 = arith.constant 0 : index
    %1 = vector.load %arg3[%c0_1, %c0_2] : memref<32x32xbf16, #tpu.memory_space<vmem>>, vector<32x32xbf16>
    %cst = arith.constant dense<0.000000e+00> : vector<16x32xf32>
    %2 = tpu.matmul %0, %1, %cst {dimension_numbers = #tpu.dot_dimension_numbers<[1], [0], [0], [1], [0, 0, 1, 1], [], []>} : vector<16x32xbf16>, vector<32x32xbf16>, vector<16x32xf32> -> vector<16x32xf32>
    %c0_3 = arith.constant 0 : index
    %c0_4 = arith.constant 0 : index
    %3 = vector.load %arg4[%c0_3, %c0_4] : memref<1x32xf32, #tpu.memory_space<vmem>>, vector<1x32xf32>
    %4 = vector.broadcast %3 : vector<1x32xf32> to vector<16x32xf32>
    %5 = arith.addf %2, %4 : vector<16x32xf32>
    %c0_5 = arith.constant 0 : index
    %c0_6 = arith.constant 0 : index
    %6 = vector.load %arg5[%c0_5, %c0_6] : memref<16x32xf32, #tpu.memory_space<vmem>>, vector<16x32xf32>
    tpu.vector_store %arg5[%c0_5, %c0_6], %5 {strides = array<i32>} : memref<16x32xf32, #tpu.memory_space<vmem>>, vector<16x32xf32>,
    return
  }
  func.func @transform_0(%arg0: i32, %arg1: i32) -> (i32, i32) {
    %c0_i32 = arith.constant 0 : i32
    %c0_i32_0 = arith.constant 0 : i32
    return %arg0, %c0_i32 : i32, i32
  }
  func.func @transform_1(%arg0: i32, %arg1: i32) -> (i32, i32) {
    %c0_i32 = arith.constant 0 : i32
    %c0_i32_0 = arith.constant 0 : i32
    return %c0_i32, %arg1 : i32, i32
  }
  func.func @transform_2(%arg0: i32, %arg1: i32) -> (i32, i32) {
    %c0_i32 = arith.constant 0 : i32
    %c0_i32_0 = arith.constant 0 : i32
    return %c0_i32, %arg1 : i32, i32
  }
  func.func @transform_3(%arg0: i32, %arg1: i32) -> (i32, i32) {
    %c0_i32 = arith.constant 0 : i32
    return %arg0, %arg1 : i32, i32
  }
}

module attributes {stable_mosaic.version = 11 : i64} {
  func.func @_add_layernorm_kernel(%arg0: i32, %arg1: memref<16x32xf32, #tpu.memory_space<vmem>>, %arg2: memref<16x32xf32, #tpu.memory_space<vmem>>, %arg3: memref<1x32xf32, #tpu.memory_space<vmem>>, %arg4: memref<1x32xf32, #tpu.memory_space<vmem>>, %arg5: memref<16x32xf32, #tpu.memory_space<vmem>>) attributes {dimension_semantics = [#tpu.dimension_semantics<parallel>], iteration_bounds = array<i64: 1>, scalar_prefetch = 0 : i64, scratch_operands = 0 : i64, tpu.core_type = #tpu.core_type<tc>, window_params = [{transform_indices = @transform_0, window_bounds = array<i64: 16, 32>}, {transform_indices = @transform_1, window_bounds = array<i64: 16, 32>}, {pipeline_mode = #tpu.pipeline_mode<synchronous>, transform_indices = @transform_2, window_bounds = array<i64: 1, 32>}, {pipeline_mode = #tpu.pipeline_mode<synchronous>, transform_indices = @transform_3, window_bounds = array<i64: 1, 32>}, {transform_indices = @transform_4, window_bounds = array<i64: 16, 32>}]} {
    %c0 = arith.constant 0 : index
    %c0_0 = arith.constant 0 : index
    %0 = vector.load %arg1[%c0, %c0_0] : memref<16x32xf32, #tpu.memory_space<vmem>>, vector<16x32xf32>
    %c0_1 = arith.constant 0 : index
    %c0_2 = arith.constant 0 : index
    %1 = vector.load %arg2[%c0_1, %c0_2] : memref<16x32xf32, #tpu.memory_space<vmem>>, vector<16x32xf32>
    %2 = arith.addf %0, %1 : vector<16x32xf32>
    %cst = arith.constant dense<0.000000e+00> : vector<16xf32>
    %3 = vector.multi_reduction <add>, %2, %cst [1] : vector<16x32xf32> to vector<16xf32>
    %4 = vector.shape_cast %3 : vector<16xf32> to vector<16x1xf32>
    %cst_3 = arith.constant 3.200000e+01 : f32
    %5 = vector.broadcast %cst_3 : f32 to vector<16x1xf32>
    %6 = arith.divf %4, %5 : vector<16x1xf32>
    %7 = vector.broadcast %6 : vector<16x1xf32> to vector<16x32xf32>
    %8 = arith.subf %2, %7 : vector<16x32xf32>
    %9 = arith.mulf %8, %8 : vector<16x32xf32>
    %cst_4 = arith.constant dense<0.000000e+00> : vector<16xf32>
    %10 = vector.multi_reduction <add>, %9, %cst_4 [1] : vector<16x32xf32> to vector<16xf32>
    %11 = vector.shape_cast %10 : vector<16xf32> to vector<16x1xf32>
    %cst_5 = arith.constant 3.200000e+01 : f32
    %12 = vector.broadcast %cst_5 : f32 to vector<16x1xf32>
    %13 = arith.divf %11, %12 : vector<16x1xf32>
    %14 = vector.broadcast %6 : vector<16x1xf32> to vector<16x32xf32>
    %15 = arith.subf %2, %14 : vector<16x32xf32>
    %cst_6 = arith.constant 9.99999974E-6 : f32
    %16 = vector.broadcast %cst_6 : f32 to vector<16x1xf32>
    %17 = arith.addf %13, %16 : vector<16x1xf32>
    %18 = math.rsqrt %17 : vector<16x1xf32>
    %19 = vector.broadcast %18 : vector<16x1xf32> to vector<16x32xf32>
    %20 = arith.mulf %15, %19 : vector<16x32xf32>
    %c0_7 = arith.constant 0 : index
    %c0_8 = arith.constant 0 : index
    %21 = vector.load %arg3[%c0_7, %c0_8] : memref<1x32xf32, #tpu.memory_space<vmem>>, vector<1x32xf32>
    %22 = vector.broadcast %21 : vector<1x32xf32> to vector<16x32xf32>
    %23 = arith.mulf %20, %22 : vector<16x32xf32>
    %c0_9 = arith.constant 0 : index
    %c0_10 = arith.constant 0 : index
    %24 = vector.load %arg4[%c0_9, %c0_10] : memref<1x32xf32, #tpu.memory_space<vmem>>, vector<1x32xf32>
    %25 = vector.broadcast %24 : vector<1x32xf32> to vector<16x32xf32>
    %26 = arith.addf %23, %25 : vector<16x32xf32>
    %c0_11 = arith.constant 0 : index
    %c0_12 = arith.constant 0 : index
    %27 = vector.load %arg5[%c0_11, %c0_12] : memref<16x32xf32, #tpu.memory_space<vmem>>, vector<16x32xf32>
    tpu.vector_store %arg5[%c0_11, %c0_12], %26 {strides = array<i32>} : memref<16x32xf32, #tpu.memory_space<vmem>>, vector<16x32xf32>,
    return
  }
  func.func @transform_0(%arg0: i32) -> (i32, i32) {
    %c0_i32 = arith.constant 0 : i32
    %c0_i32_0 = arith.constant 0 : i32
    return %arg0, %c0_i32 : i32, i32
  }
  func.func @transform_1(%arg0: i32) -> (i32, i32) {
    %c0_i32 = arith.constant 0 : i32
    %c0_i32_0 = arith.constant 0 : i32
    return %arg0, %c0_i32 : i32, i32
  }
  func.func @transform_2(%arg0: i32) -> (i32, i32) {
    %c0_i32 = arith.constant 0 : i32
    %c0_i32_0 = arith.constant 0 : i32
    %c0_i32_1 = arith.constant 0 : i32
    return %c0_i32, %c0_i32_0 : i32, i32
  }
  func.func @transform_3(%arg0: i32) -> (i32, i32) {
    %c0_i32 = arith.constant 0 : i32
    %c0_i32_0 = arith.constant 0 : i32
    %c0_i32_1 = arith.constant 0 : i32
    return %c0_i32, %c0_i32_0 : i32, i32
  }
  func.func @transform_4(%arg0: i32) -> (i32, i32) {
    %c0_i32 = arith.constant 0 : i32
    %c0_i32_0 = arith.constant 0 : i32
    return %arg0, %c0_i32 : i32, i32
  }
}

module attributes {stable_mosaic.version = 11 : i64} {
  func.func @_linear_gelu_kernel(%arg0: i32, %arg1: i32, %arg2: memref<16x32xbf16, #tpu.memory_space<vmem>>, %arg3: memref<32x64xbf16, #tpu.memory_space<vmem>>, %arg4: memref<1x64xf32, #tpu.memory_space<vmem>>, %arg5: memref<16x64xbf16, #tpu.memory_space<vmem>>) attributes {dimension_semantics = [#tpu.dimension_semantics<parallel>, #tpu.dimension_semantics<parallel>], iteration_bounds = array<i64: 1, 1>, scalar_prefetch = 0 : i64, scratch_operands = 0 : i64, tpu.core_type = #tpu.core_type<tc>, window_params = [{transform_indices = @transform_0, window_bounds = array<i64: 16, 32>}, {transform_indices = @transform_1, window_bounds = array<i64: 32, 64>}, {transform_indices = @transform_2, window_bounds = array<i64: 1, 64>}, {transform_indices = @transform_3, window_bounds = array<i64: 16, 64>}]} {
    %c0 = arith.constant 0 : index
    %c0_0 = arith.constant 0 : index
    %0 = vector.load %arg2[%c0, %c0_0] : memref<16x32xbf16, #tpu.memory_space<vmem>>, vector<16x32xbf16>
    %c0_1 = arith.constant 0 : index
    %c0_2 = arith.constant 0 : index
    %1 = vector.load %arg3[%c0_1, %c0_2] : memref<32x64xbf16, #tpu.memory_space<vmem>>, vector<32x64xbf16>
    %cst = arith.constant dense<0.000000e+00> : vector<16x64xf32>
    %2 = tpu.matmul %0, %1, %cst {dimension_numbers = #tpu.dot_dimension_numbers<[1], [0], [0], [1], [0, 0, 1, 1], [], []>} : vector<16x32xbf16>, vector<32x64xbf16>, vector<16x64xf32> -> vector<16x64xf32>
    %c0_3 = arith.constant 0 : index
    %c0_4 = arith.constant 0 : index
    %3 = vector.load %arg4[%c0_3, %c0_4] : memref<1x64xf32, #tpu.memory_space<vmem>>, vector<1x64xf32>
    %4 = vector.broadcast %3 : vector<1x64xf32> to vector<16x64xf32>
    %5 = arith.addf %2, %4 : vector<16x64xf32>
    %cst_5 = arith.constant 5.000000e-01 : f32
    %6 = vector.broadcast %cst_5 : f32 to vector<16x64xf32>
    %7 = arith.mulf %6, %5 : vector<16x64xf32>
    %cst_6 = arith.constant 0.707106769 : f32
    %8 = vector.broadcast %cst_6 : f32 to vector<16x64xf32>
    %9 = arith.mulf %5, %8 : vector<16x64xf32>
    %10 = math.erf %9 : vector<16x64xf32>
    %cst_7 = arith.constant 1.000000e+00 : f32
    %11 = vector.broadcast %cst_7 : f32 to vector<16x64xf32>
    %12 = arith.addf %11, %10 : vector<16x64xf32>
    %13 = arith.mulf %7, %12 : vector<16x64xf32>
    %14 = arith.truncf %13 : vector<16x64xf32> to vector<16x64xbf16>
    %c0_8 = arith.constant 0 : index
    %c0_9 = arith.constant 0 : index
    %15 = vector.load %arg5[%c0_8, %c0_9] : memref<16x64xbf16, #tpu.memory_space<vmem>>, vector<16x64xbf16>
    tpu.vector_store %arg5[%c0_8, %c0_9], %14 {strides = array<i32>} : memref<16x64xbf16, #tpu.memory_space<vmem>>, vector<16x64xbf16>,
    return
  }
  func.func @transform_0(%arg0: i32, %arg1: i32) -> (i32, i32) {
    %c0_i32 = arith.constant 0 : i32
    %c0_i32_0 = arith.constant 0 : i32
    return %arg0, %c0_i32 : i32, i32
  }
  func.func @transform_1(%arg0: i32, %arg1: i32) -> (i32, i32) {
    %c0_i32 = arith.constant 0 : i32
    %c0_i32_0 = arith.constant 0 : i32
    return %c0_i32, %arg1 : i32, i32
  }
  func.func @transform_2(%arg0: i32, %arg1: i32) -> (i32, i32) {
    %c0_i32 = arith.constant 0 : i32
    %c0_i32_0 = arith.constant 0 : i32
    return %c0_i32, %arg1 : i32, i32
  }
  func.func @transform_3(%arg0: i32, %arg1: i32) -> (i32, i32) {
    %c0_i32 = arith.constant 0 : i32
    return %arg0, %arg1 : i32, i32
  }
}

module attributes {stable_mosaic.version = 11 : i64} {
  func.func @_linear_kernel(%arg0: i32, %arg1: i32, %arg2: memref<16x64xbf16, #tpu.memory_space<vmem>>, %arg3: memref<64x32xbf16, #tpu.memory_space<vmem>>, %arg4: memref<1x32xf32, #tpu.memory_space<vmem>>, %arg5: memref<16x32xf32, #tpu.memory_space<vmem>>) attributes {dimension_semantics = [#tpu.dimension_semantics<parallel>, #tpu.dimension_semantics<parallel>], iteration_bounds = array<i64: 1, 1>, scalar_prefetch = 0 : i64, scratch_operands = 0 : i64, tpu.core_type = #tpu.core_type<tc>, window_params = [{transform_indices = @transform_0, window_bounds = array<i64: 16, 64>}, {transform_indices = @transform_1, window_bounds = array<i64: 64, 32>}, {transform_indices = @transform_2, window_bounds = array<i64: 1, 32>}, {transform_indices = @transform_3, window_bounds = array<i64: 16, 32>}]} {
    %c0 = arith.constant 0 : index
    %c0_0 = arith.constant 0 : index
    %0 = vector.load %arg2[%c0, %c0_0] : memref<16x64xbf16, #tpu.memory_space<vmem>>, vector<16x64xbf16>
    %c0_1 = arith.constant 0 : index
    %c0_2 = arith.constant 0 : index
    %1 = vector.load %arg3[%c0_1, %c0_2] : memref<64x32xbf16, #tpu.memory_space<vmem>>, vector<64x32xbf16>
    %cst = arith.constant dense<0.000000e+00> : vector<16x32xf32>
    %2 = tpu.matmul %0, %1, %cst {dimension_numbers = #tpu.dot_dimension_numbers<[1], [0], [0], [1], [0, 0, 1, 1], [], []>} : vector<16x64xbf16>, vector<64x32xbf16>, vector<16x32xf32> -> vector<16x32xf32>
    %c0_3 = arith.constant 0 : index
    %c0_4 = arith.constant 0 : index
    %3 = vector.load %arg4[%c0_3, %c0_4] : memref<1x32xf32, #tpu.memory_space<vmem>>, vector<1x32xf32>
    %4 = vector.broadcast %3 : vector<1x32xf32> to vector<16x32xf32>
    %5 = arith.addf %2, %4 : vector<16x32xf32>
    %c0_5 = arith.constant 0 : index
    %c0_6 = arith.constant 0 : index
    %6 = vector.load %arg5[%c0_5, %c0_6] : memref<16x32xf32, #tpu.memory_space<vmem>>, vector<16x32xf32>
    tpu.vector_store %arg5[%c0_5, %c0_6], %5 {strides = array<i32>} : memref<16x32xf32, #tpu.memory_space<vmem>>, vector<16x32xf32>,
    return
  }
  func.func @transform_0(%arg0: i32, %arg1: i32) -> (i32, i32) {
    %c0_i32 = arith.constant 0 : i32
    %c0_i32_0 = arith.constant 0 : i32
    return %arg0, %c0_i32 : i32, i32
  }
  func.func @transform_1(%arg0: i32, %arg1: i32) -> (i32, i32) {
    %c0_i32 = arith.constant 0 : i32
    %c0_i32_0 = arith.constant 0 : i32
    return %c0_i32, %arg1 : i32, i32
  }
  func.func @transform_2(%arg0: i32, %arg1: i32) -> (i32, i32) {
    %c0_i32 = arith.constant 0 : i32
    %c0_i32_0 = arith.constant 0 : i32
    return %c0_i32, %arg1 : i32, i32
  }
  func.func @transform_3(%arg0: i32, %arg1: i32) -> (i32, i32) {
    %c0_i32 = arith.constant 0 : i32
    return %arg0, %arg1 : i32, i32
  }
}

module attributes {stable_mosaic.version = 11 : i64} {
  func.func @_add_layernorm_kernel(%arg0: i32, %arg1: memref<16x32xf32, #tpu.memory_space<vmem>>, %arg2: memref<16x32xf32, #tpu.memory_space<vmem>>, %arg3: memref<1x32xf32, #tpu.memory_space<vmem>>, %arg4: memref<1x32xf32, #tpu.memory_space<vmem>>, %arg5: memref<16x32xf32, #tpu.memory_space<vmem>>) attributes {dimension_semantics = [#tpu.dimension_semantics<parallel>], iteration_bounds = array<i64: 1>, scalar_prefetch = 0 : i64, scratch_operands = 0 : i64, tpu.core_type = #tpu.core_type<tc>, window_params = [{transform_indices = @transform_0, window_bounds = array<i64: 16, 32>}, {transform_indices = @transform_1, window_bounds = array<i64: 16, 32>}, {pipeline_mode = #tpu.pipeline_mode<synchronous>, transform_indices = @transform_2, window_bounds = array<i64: 1, 32>}, {pipeline_mode = #tpu.pipeline_mode<synchronous>, transform_indices = @transform_3, window_bounds = array<i64: 1, 32>}, {transform_indices = @transform_4, window_bounds = array<i64: 16, 32>}]} {
    %c0 = arith.constant 0 : index
    %c0_0 = arith.constant 0 : index
    %0 = vector.load %arg1[%c0, %c0_0] : memref<16x32xf32, #tpu.memory_space<vmem>>, vector<16x32xf32>
    %c0_1 = arith.constant 0 : index
    %c0_2 = arith.constant 0 : index
    %1 = vector.load %arg2[%c0_1, %c0_2] : memref<16x32xf32, #tpu.memory_space<vmem>>, vector<16x32xf32>
    %2 = arith.addf %0, %1 : vector<16x32xf32>
    %cst = arith.constant dense<0.000000e+00> : vector<16xf32>
    %3 = vector.multi_reduction <add>, %2, %cst [1] : vector<16x32xf32> to vector<16xf32>
    %4 = vector.shape_cast %3 : vector<16xf32> to vector<16x1xf32>
    %cst_3 = arith.constant 3.200000e+01 : f32
    %5 = vector.broadcast %cst_3 : f32 to vector<16x1xf32>
    %6 = arith.divf %4, %5 : vector<16x1xf32>
    %7 = vector.broadcast %6 : vector<16x1xf32> to vector<16x32xf32>
    %8 = arith.subf %2, %7 : vector<16x32xf32>
    %9 = arith.mulf %8, %8 : vector<16x32xf32>
    %cst_4 = arith.constant dense<0.000000e+00> : vector<16xf32>
    %10 = vector.multi_reduction <add>, %9, %cst_4 [1] : vector<16x32xf32> to vector<16xf32>
    %11 = vector.shape_cast %10 : vector<16xf32> to vector<16x1xf32>
    %cst_5 = arith.constant 3.200000e+01 : f32
    %12 = vector.broadcast %cst_5 : f32 to vector<16x1xf32>
    %13 = arith.divf %11, %12 : vector<16x1xf32>
    %14 = vector.broadcast %6 : vector<16x1xf32> to vector<16x32xf32>
    %15 = arith.subf %2, %14 : vector<16x32xf32>
    %cst_6 = arith.constant 9.99999974E-6 : f32
    %16 = vector.broadcast %cst_6 : f32 to vector<16x1xf32>
    %17 = arith.addf %13, %16 : vector<16x1xf32>
    %18 = math.rsqrt %17 : vector<16x1xf32>
    %19 = vector.broadcast %18 : vector<16x1xf32> to vector<16x32xf32>
    %20 = arith.mulf %15, %19 : vector<16x32xf32>
    %c0_7 = arith.constant 0 : index
    %c0_8 = arith.constant 0 : index
    %21 = vector.load %arg3[%c0_7, %c0_8] : memref<1x32xf32, #tpu.memory_space<vmem>>, vector<1x32xf32>
    %22 = vector.broadcast %21 : vector<1x32xf32> to vector<16x32xf32>
    %23 = arith.mulf %20, %22 : vector<16x32xf32>
    %c0_9 = arith.constant 0 : index
    %c0_10 = arith.constant 0 : index
    %24 = vector.load %arg4[%c0_9, %c0_10] : memref<1x32xf32, #tpu.memory_space<vmem>>, vector<1x32xf32>
    %25 = vector.broadcast %24 : vector<1x32xf32> to vector<16x32xf32>
    %26 = arith.addf %23, %25 : vector<16x32xf32>
    %c0_11 = arith.constant 0 : index
    %c0_12 = arith.constant 0 : index
    %27 = vector.load %arg5[%c0_11, %c0_12] : memref<16x32xf32, #tpu.memory_space<vmem>>, vector<16x32xf32>
    tpu.vector_store %arg5[%c0_11, %c0_12], %26 {strides = array<i32>} : memref<16x32xf32, #tpu.memory_space<vmem>>, vector<16x32xf32>,
    return
  }
  func.func @transform_0(%arg0: i32) -> (i32, i32) {
    %c0_i32 = arith.constant 0 : i32
    %c0_i32_0 = arith.constant 0 : i32
    return %arg0, %c0_i32 : i32, i32
  }
  func.func @transform_1(%arg0: i32) -> (i32, i32) {
    %c0_i32 = arith.constant 0 : i32
    %c0_i32_0 = arith.constant 0 : i32
    return %arg0, %c0_i32 : i32, i32
  }
  func.func @transform_2(%arg0: i32) -> (i32, i32) {
    %c0_i32 = arith.constant 0 : i32
    %c0_i32_0 = arith.constant 0 : i32
    %c0_i32_1 = arith.constant 0 : i32
    return %c0_i32, %c0_i32_0 : i32, i32
  }
  func.func @transform_3(%arg0: i32) -> (i32, i32) {
    %c0_i32 = arith.constant 0 : i32
    %c0_i32_0 = arith.constant 0 : i32
    %c0_i32_1 = arith.constant 0 : i32
    return %c0_i32, %c0_i32_0 : i32, i32
  }
  func.func @transform_4(%arg0: i32) -> (i32, i32) {
    %c0_i32 = arith.constant 0 : i32
    %c0_i32_0 = arith.constant 0 : i32
    return %arg0, %c0_i32 : i32, i32
  }
}

</mosaic_0001>

<bundles_post_ra>
// kernel: smiles_bert_forward.15
= control target key start
LH: loop header
LB: loop body
LE: loop exit
PB: predicated region body
PF: predicated region fallthrough
CT: control target
= control target key end

     0   :  { %vm28_vm0 = vcmask 1043456   ;;  %v90_v0 = vmov 0.0   ;;  %vm91_vm1 = vmmov 0   ;;  %vm24_vm2 = vcmask 64512   ;;  %s124_s1 = inlined_call_operand.vmem [shape: bf16[8,32], index: 1, kind: input, shape index: {}]   ;;  %s125_s0 = inlined_call_operand.vmem [shape: bf16[8,8], index: 0, kind: input, shape index: {}]   ;;  %s126_s2 = inlined_call_operand.vmem [shape: f32[1,32], index: 2, kind: input, shape index: {}]   ;;  %s127_s3 = inlined_call_operand.vmem [shape: f32[8,32], index: 3, kind: output, shape index: {}]  }
   0x1   :  { %82 = vmatprep.subr.bf16.mxu0 %v90_v0  ;;  %v16_v1 = vld [vmem:[%s124_s1] sm:$0xf]  ;;  %84 = vmatprep.mubr.msk.bf16.mxu0 %vm91_vm1, %v90_v0  ;;  %vm72_vm3 = vcmask 261120  }
   0x2   :  { %v30_v2 = vsel %vm28_vm0, %v16_v1, 0  ;;  %v15_v3 = vld [vmem:[%s125_s0] sm:$0xf] }
   0x3   :  { %83 = vmatpush3.bf16.msra.mxu0 %v30_v2  ;;  %v78_v4 = vld [vmem:[%s126_s2] ss:$0 sm:$0xff] }
   0x6   :  { %85 = vmatmul.mubr.msk.bf16.vlgmr.msra.gmra.mrb[0].mxu0 %vm24_vm2, %v15_v3 }
  0xd9   :  { %v66_v5 = vpop.f32.mrb[0].mxu0 }
  0xda   :  { %v67_v6 = vadd.f32 %v78_v4, %v66_v5  ;;  %v86_v7 = vpop.f32.mrb[1].mxu0 }
  0xdb   :  { %v69_v8 = vpop.f32.mrb[2].mxu0 }
  0xdc   :  { %73 = vst.msk [vmem:[%s127_s3] sm:$0xff] %vm72_vm3, %v67_v6  ;;  %v87_v9 = vpop.f32.mrb[3].mxu0 }

// kernel: smiles_bert_forward.16
= control target key start
LH: loop header
LB: loop body
LE: loop exit
PB: predicated region body
PF: predicated region fallthrough
CT: control target
= control target key end

     0   :  { %v130_v0 = vmov 0.0   ;;  %vm131_vm0 = vmmov 0   ;;  %vm45_vm1 = vcmask 261120   ;;  %vm98_vm2 = vcmask 781312   ;;  %s170_s1 = inlined_call_operand.vmem [shape: bf16[32,96], index: 1, kind: input, shape index: {}]   ;;  %s171_s0 = inlined_call_operand.vmem [shape: bf16[16,32], index: 0, kind: input, shape index: {}]   ;;  %s172_s2 = inlined_call_operand.vmem [shape: f32[1,96], index: 2, kind: input, shape index: {}]   ;;  %s173_s3 = inlined_call_operand.vmem [shape: bf16[16,96], index: 3, kind: output, shape index: {}]  }
   0x1   :  { %117 = vmatprep.subr.bf16.mxu0 %v130_v0  ;;  %v127_v1 = vld [vmem:[%s170_s1] sm:$0xff]   ;;  %121 = vmatprep.mubr.msk.bf16.mxu0 %vm131_vm0, %v130_v0  ;;  %v128_v2 = vld [vmem:[%s170_s1 + $0x8] sm:$0xff]  }
   0x2   :  { %118 = vmatpush3.bf16.msra.mxu0 %v127_v1  ;;  %v129_v3 = vld [vmem:[%s171_s0] sm:$0xff]  }
   0x3   :  { %119 = vmatprep.subr.bf16.mxu0 %v130_v0  ;;  %v105_v4 = vld [vmem:[%s172_s2] ss:$0 sm:$0xff] }
   0x6   :  { %120 = vmatpush3.bf16.msra.mxu0 %v128_v2 }
   0x9   :  { %122 = vmatmul.mubr.msk.bf16.vlgmr.msra.gmra.mrb[0].mxu0 %vm45_vm1, %v129_v3 }
  0xdc   :  { %v83_v5 = vpop.f32.mrb[0].mxu0 }
  0xdd   :  { %v84_v6 = vadd.f32 %v105_v4, %v83_v5  ;;  %v123_v7 = vpop.f32.mrb[1].mxu0 }
  0xde   :  { %v86_v8 = vpop.f32.mrb[2].mxu0 }
  0xdf   :  { %v112_v9 = vpack.c.bf16 %v84_v6, %v84_v6  ;;  %v87_v10 = vadd.f32 %v105_v4, %v86_v8  ;;  %v124_v11 = vpop.f32.mrb[3].mxu0 }
  0xe1   :  { %99 = vst.msk [vmem:[%s173_s3] sm:$0xf] %vm98_vm2, %v112_v9  ;;  %v113_v12 = vpack.c.bf16 %v87_v10, %v87_v10 }
  0xe3   :  { %100 = vst.msk [vmem:[%s173_s3 + $0x4] sm:$0xf] %vm98_vm2, %v113_v12 }

// kernel: smiles_bert_forward.18
= control target key start
LH: loop header
LB: loop body
LE: loop exit
PB: predicated region body
PF: predicated region fallthrough
CT: control target
= control target key end

     0   :  { %v117_v0 = vmov 0.0   ;;  %vm118_vm0 = vmmov 0   ;;  %vm45_vm1 = vcmask 261120   ;;  %s157_s1 = inlined_call_operand.vmem [shape: bf16[32,32], index: 1, kind: input, shape index: {}]   ;;  %s158_s0 = inlined_call_operand.vmem [shape: bf16[16,32], index: 0, kind: input, shape index: {}]   ;;  %s159_s2 = inlined_call_operand.vmem [shape: f32[1,32], index: 2, kind: input, shape index: {}]   ;;  %s160_s3 = inlined_call_operand.vmem [shape: f32[16,32], index: 3, kind: output, shape index: {}]  }
   0x1   :  { %104 = vmatprep.subr.bf16.mxu0 %v117_v0  ;;  %v114_v1 = vld [vmem:[%s157_s1] sm:$0xff]   ;;  %108 = vmatprep.mubr.msk.bf16.mxu0 %vm118_vm0, %v117_v0  ;;  %v115_v2 = vld [vmem:[%s157_s1 + $0x8] sm:$0xff]  }
   0x2   :  { %105 = vmatpush3.bf16.msra.mxu0 %v114_v1  ;;  %v116_v3 = vld [vmem:[%s158_s0] sm:$0xff]  }
   0x3   :  { %106 = vmatprep.subr.bf16.mxu0 %v117_v0  ;;  %v96_v4 = vld [vmem:[%s159_s2] ss:$0 sm:$0xff] }
   0x6   :  { %107 = vmatpush3.bf16.msra.mxu0 %v115_v2 }
   0x9   :  { %109 = vmatmul.mubr.msk.bf16.vlgmr.msra.gmra.mrb[0].mxu0 %vm45_vm1, %v116_v3 }
  0xdc   :  { %v83_v5 = vpop.f32.mrb[0].mxu0 }
  0xdd   :  { %v84_v6 = vadd.f32 %v96_v4, %v83_v5  ;;  %v110_v7 = vpop.f32.mrb[1].mxu0 }
  0xde   :  { %v86_v8 = vpop.f32.mrb[2].mxu0 }
  0xdf   :  { %90 = vst.msk [vmem:[%s160_s3] sm:$0xff] %vm45_vm1, %v84_v6  ;;  %v87_v9 = vadd.f32 %v96_v4, %v86_v8  ;;  %v111_v10 = vpop.f32.mrb[3].mxu0 }
  0xe1   :  { %91 = vst.msk [vmem:[%s160_s3 + $0x8] sm:$0xff] %vm45_vm1, %v87_v9 }

// kernel: smiles_bert_forward.17
= control target key start
LH: loop header
LB: loop body
LE: loop exit
PB: predicated region body
PF: predicated region fallthrough
CT: control target
= control target key end

     0   :  { %s857_s9 = smov 0   ;;  %s953_s0 = inlined_call_operand.vmem [shape: bf16[2,8,96], index: 0, kind: input, shape index: {}]   ;;  %s954_s1 = inlined_call_operand.vmem [shape: f32[2,1,8], index: 1, kind: input, shape index: {}]   ;;  %s955_s2 = inlined_call_operand.vmem [shape: f32[2,8,32], index: 2, kind: output, shape index: {}]  }
   0x1 LB: > { %s694_s10 = sadd.s32 4294967295, %s824_s9   ;;  %p698_p0 = scmp.ge.s32.totalorder %s824_s9, 1  ;;  %s824_s9 = sphi %s857_s9, %s12_s9  }
   0x2   : > { %p119_p1 = scmp.lt.s32.totalorder %s824_s9, 3 }
   0x4   : > { %p120_p2 = pnand %p698_p0, %p119_p1 }
   0x5   : > { %p142_p3 = scmp.lt.s32.totalorder (!%p120_p2), %s694_s10, 1  ;;  %v826_v0 = vmov (!%p120_p2), 0.0   ;;  %vm827_vm0 = vmmov (!%p120_p2), 0   ;;  %s828_s15 = smov (!%p120_p2), 96   ;;  %vm161_vm1 = vcmask (!%p120_p2), 64512   ;;  %vm233_vm2 = vcmask (!%p120_p2), 1043456  }
   0x6   : > { %123 = sbr.rel (%p120_p2) target bundleno = 1604 (0x644), region = 28  ;;  %729 = vmatprep.subr.bf16.mxu0 (!%p120_p2), %v826_v0  ;;  %731 = vmatprep.mubr.msk.bf16.mxu0 (!%p120_p2), %vm827_vm0, %v826_v0  ;;  %s829_s16 = smov (!%p120_p2), 64   ;;  %vm626_vm3 = vcmask (!%p120_p2), 130048   ;;  %vm628_vm4 = vcmask (!%p120_p2), 195584   ;;  %vm630_vm5 = vcmask (!%p120_p2), 261120  }
   0x7   : > { %735 = vmatprep.subr.bf16.mxu1 (!%p120_p2), %v826_v0  ;;  %737 = vmatprep.mubr.msk.bf16.mxu1 (!%p120_p2), %vm827_vm0, %v826_v0  ;;  %s830_s17 = smov (!%p120_p2), 88   ;;  %s831_s21 = smov (!%p120_p2), 72  }
   0x8   : > { %s832_s22 = smov (!%p120_p2), 120   ;;  %s833_s23 = smov (!%p120_p2), 80  }
   0x9   : > { %s834_s24 = smov (!%p120_p2), 112   ;;  %s835_s25 = smov (!%p120_p2), 104  }
   0xa   : > { %s836_s26 = smov (!%p120_p2), 56   ;;  %s837_s27 = smov (!%p120_p2), 48  }
   0xb   : > { %s838_s28 = smov (!%p120_p2), 40   ;;  %s839_s29 = smov (!%p120_p2), 8  }
   0xc   : > { %s840_s30 = smov (!%p120_p2), 16   ;;  %s841_s3 = smov (!%p120_p2), 24  }
   0xd   : > { %s957_s10 = smov (!%p142_p3, %s694_s10), 1 }
   0xe   : > { %s699_s11 = sshll.u32 %s957_s10, 2  ;;  %s148_s20 = scalar_lea.vmem %s954_s1, %s957_s10 }
   0xf   : > { %s145_s14 = scalar_lea.vmem %s953_s0, %s699_s11  ;;  %v891_v6 = vld [vmem:[%s148_s20] ss:$0 sm:$0xff]  ;;  %s700_s4 = sshll.u32 %s957_s10, 3 }
  0x10   : > { %v154_v1 = vld [vmem:[%s145_s14] sm:$0xf]  ;;  %s152_s7 = scalar_lea.vmem %s955_s2, %s700_s4 }
  0x11   : > { %v877_v2 = vcombine.low %v154_v1, %v154_v1 }
  0x13   : > { %159 = vrot.lane.b32.xlu0 %v877_v2, %s828_s15  ;;  %228 = vrot.lane.b32.xlu1 %v877_v2, %s829_s16 }
  0x17   : > { %279 = vrot.lane.b32.xlu1 %v877_v2, %s830_s17 }
  0x85   : > { %v160_v3 = vpop.permute.xlu0 %159  ;;  %v229_v13 = vpop.permute.xlu1 %228 }
  0x86   : > { %v166_v4 = vsel %vm161_vm1, %v160_v3, 0  ;;  %v235_v14 = vsel %vm233_vm2, %v229_v13, 0 }
  0x87   : > { %730 = vmatpush3.bf16.xpose.msra.mxu0 %v166_v4  ;;  %736 = vmatpush3.bf16.msra.mxu1 %v235_v14 }
  0x88   : > { %747 = vmatprep.subr.bf16.mxu0 %v826_v0  ;;  %741 = vmatprep.subr.bf16.mxu1 %v826_v0 }
  0x89   : > { %v280_v20 = vpop.permute.xlu1 %279 }
  0x8a   : > { %v285_v26 = vsel %vm161_vm1, %v280_v20, 0 }
  0x8e   : > { %732 = vmatmul.mubr.msk.bf16.vlgmr.msra.gmra.mrb[0].mxu0 %vm161_vm1, %v154_v1 }
  0x8f   : > { %749 = vmatprep.mubr.msk.bf16.mxu0 %vm827_vm0, %v826_v0 }
 0x161   : > { %v202_v5 = vpop.f32.mrb[0].mxu0 }
 0x162   : > { %v208_v7 = vmul.f32 0.35355338, %v202_v5  ;;  %v733_v8 = vpop.f32.mrb[1].mxu0 }
 0x163   : > { %v205_v9 = vpop.f32.mrb[2].mxu0 }
 0x164   : > { %v734_v10 = vpop.f32.mrb[3].mxu0  ;;  %v215_v11 = vadd.f32 %v891_v6, %v208_v7 }
 0x166   : > { %v216_v12 = vsel %vm161_vm1, %v215_v11, -inf }
 0x167   : > { %217 = vmax.xlane.f32.xlu0 %v216_v12 }
 0x17d   : > { %503 = vrot.lane.b32.xlu0 %v877_v2, %s831_s21 }
 0x1f4   : > { %v218_v15 = vpop.xlane.xlu0 %217 }
 0x1f5   : > { %v219_v16 = vsub.f32 %v215_v11, %v218_v15 }
 0x1f7   : > { %v220_v17 = vmul.f32 1.442695, %v219_v16 }
 0x1f8   : > { %v504_v29 = vpop.permute.xlu0 %503 }
 0x1f9   : > { %802 = vpow2.f32 %v220_v17  ;;  %v509_v31 = vsel %vm161_vm1, %v504_v29, 0 }
 0x203   : > { %v803_v18 = vpop.eup %802 }
 0x204   : > { %v222_v19 = vsel %vm161_vm1, %v803_v18, 0.0 }
 0x205   : > { %223 = vadd.xlane.f32.xlu1 %v222_v19 }
 0x216   : > { %277 = vrot.lane.b32.xlu1 %v877_v2, %s832_s22 }
 0x21a   : > { %391 = vrot.lane.b32.xlu1 %v877_v2, %s833_s23 }
 0x21e   : > { %389 = vrot.lane.b32.xlu1 %v877_v2, %s834_s24 }
 0x222   : > { %501 = vrot.lane.b32.xlu1 %v877_v2, %s835_s25 }
 0x292   : > { %v224_v21 = vpop.xlane.xlu1 %223 }
 0x293   : > { %804 = vrcp.f32 %v224_v21 }
 0x296   : > { %v278_v24 = vpop.permute.xlu1 %277 }
 0x29a   : > { %v392_v27 = vpop.permute.xlu1 %391 }
 0x29b   : > { %v397_v28 = vsel %vm161_vm1, %v392_v27, 0 }
 0x29d   : > { %v805_v22 = vpop.eup %804 }
 0x29e   : > { %v226_v23 = vmul.f32 %v805_v22, %v803_v18  ;;  %v390_v30 = vpop.permute.xlu1 %389 }
 0x2a0   : > { %v227_v25 = vpack.c.bf16 %v226_v23, %v226_v23 }
 0x2a2   : > { %738 = vmatmul.mubr.msk.bf16.vlgmr.msra.gmra.mrb[0].mxu1 %vm161_vm1, %v227_v25  ;;  %v502_v32 = vpop.permute.xlu1 %501 }
 0x2a3   : > { %742 = vmatpush3.bf16.xpose.msra.mxu1 %v285_v26  ;;  %743 = vmatprep.mubr.msk.bf16.mxu1 %vm827_vm0, %v826_v0 }
 0x2a4   : > { %753 = vmatprep.subr.bf16.mxu1 %v826_v0 }
 0x2aa   : > { %744 = vmatmul.mubr.msk.bf16.vlgmr.msra.gmra.mrb[4].mxu1 %vm161_vm1, %v278_v24 }
 0x2ab   : > { %754 = vmatpush3.bf16.xpose.msra.mxu1 %v397_v28  ;;  %755 = vmatprep.mubr.msk.bf16.mxu1 %vm827_vm0, %v826_v0 }
 0x2ac   : > { %765 = vmatprep.subr.bf16.mxu1 %v826_v0 }
 0x2b2   : > { %756 = vmatmul.mubr.msk.bf16.vlgmr.msra.gmra.mrb[8].mxu1 %vm161_vm1, %v390_v30 }
 0x2b3   : > { %766 = vmatpush3.bf16.xpose.msra.mxu1 %v509_v31  ;;  %767 = vmatprep.mubr.msk.bf16.mxu1 %vm827_vm0, %v826_v0 }
 0x2ba   : > { %768 = vmatmul.mubr.msk.bf16.vlgmr.msra.gmra.mrb[12].mxu1 %vm161_vm1, %v502_v32 }
 0x375   : > { %v918_v33 = vpop.f32.mrb[0].mxu1 }
 0x376   : > { %v739_v34 = vpop.f32.mrb[1].mxu1 }
 0x377   : > { %v274_v35 = vpop.f32.mrb[2].mxu1 }
 0x378   : > { %v740_v36 = vpop.f32.mrb[3].mxu1 }
 0x37d   : > { %v321_v37 = vpop.f32.mrb[4].mxu1 }
 0x37e   : > { %v327_v38 = vmul.f32 0.35355338, %v321_v37  ;;  %v745_v39 = vpop.f32.mrb[5].mxu1 }
 0x37f   : > { %v324_v40 = vpop.f32.mrb[6].mxu1 }
 0x380   : > { %v746_v41 = vpop.f32.mrb[7].mxu1  ;;  %v328_v42 = vadd.f32 %v891_v6, %v327_v38 }
 0x382   : > { %v329_v43 = vsel %vm161_vm1, %v328_v42, -inf }
 0x383   : > { %330 = vmax.xlane.f32.xlu1 %v329_v43 }
 0x385   : > { %v433_v44 = vpop.f32.mrb[8].mxu1 }
 0x386   : > { %v439_v45 = vmul.f32 0.35355338, %v433_v44  ;;  %v757_v46 = vpop.f32.mrb[9].mxu1 }
 0x387   : > { %v436_v47 = vpop.f32.mrb[10].mxu1 }
 0x388   : > { %v440_v48 = vadd.f32 %v891_v6, %v439_v45  ;;  %v758_v49 = vpop.f32.mrb[11].mxu1 }
 0x38a   : > { %v441_v50 = vsel %vm161_vm1, %v440_v48, -inf }
 0x38b   : > { %442 = vmax.xlane.f32.xlu0 %v441_v50 }
 0x38d   : > { %v545_v51 = vpop.f32.mrb[12].mxu1 }
 0x38e   : > { %v551_v52 = vmul.f32 0.35355338, %v545_v51  ;;  %v769_v53 = vpop.f32.mrb[13].mxu1 }
 0x38f   : > { %v548_v54 = vpop.f32.mrb[14].mxu1 }
 0x390   : > { %v552_v55 = vadd.f32 %v891_v6, %v551_v52  ;;  %v770_v56 = vpop.f32.mrb[15].mxu1 }
 0x392   : > { %v553_v57 = vsel %vm161_vm1, %v552_v55, -inf }
 0x393   : > { %554 = vmax.xlane.f32.xlu1 %v553_v57 }
 0x410   : > { %v331_v58 = vpop.xlane.xlu1 %330 }
 0x411   : > { %v332_v59 = vsub.f32 %v328_v42, %v331_v58 }
 0x413   : > { %v333_v60 = vmul.f32 1.442695, %v332_v59 }
 0x415   : > { %806 = vpow2.f32 %v333_v60 }
 0x418   : > { %v443_v6 = vpop.xlane.xlu0 %442 }
 0x419   : > { %v444_v7 = vsub.f32 %v440_v48, %v443_v6 }
 0x41b   : > { %v445_v8 = vmul.f32 1.442695, %v444_v7 }
 0x41f   : > { %v807_v61 = vpop.eup %806 }
 0x420   : > { %v555_v62 = vpop.xlane.xlu1 %554  ;;  %v335_v63 = vsel %vm161_vm1, %v807_v61, 0.0 }
 0x421   : > { %v556_v1 = vsub.f32 %v552_v55, %v555_v62  ;;  %336 = vadd.xlane.f32.xlu1 %v335_v63 }
 0x423   : > { %v557_v3 = vmul.f32 1.442695, %v556_v1 }
 0x425   : > { %808 = vpow2.f32 %v557_v3 }
 0x426   : > { %810 = vpow2.f32 %v445_v8 }
 0x42f   : > { %v809_v4 = vpop.eup %808 }
 0x430   : > { %v559_v5 = vsel %vm161_vm1, %v809_v4, 0.0  ;;  %v811_v9 = vpop.eup %810 }
 0x431   : > { %560 = vadd.xlane.f32.xlu0 %v559_v5  ;;  %v447_v10 = vsel %vm161_vm1, %v811_v9, 0.0 }
 0x432   : > { %341 = vrot.lane.b32.xlu1 %v877_v2, %s836_s26 }
 0x447   : > { %453 = vrot.lane.b32.xlu0 %v877_v2, %s837_s27 }
 0x456   : > { %448 = vadd.xlane.f32.xlu1 %v447_v10 }
 0x467   : > { %565 = vrot.lane.b32.xlu1 %v877_v2, %s838_s28 }
 0x4ae   : > { %v337_v11 = vpop.xlane.xlu1 %336 }
 0x4af   : > { %812 = vrcp.f32 %v337_v11 }
 0x4b2   : > { %v342_v12 = vpop.permute.xlu1 %341 }
 0x4b3   : > { %v347_v13 = vsel %vm233_vm2, %v342_v12, 0 }
 0x4b4   : > { %748 = vmatpush3.bf16.msra.mxu0 %v347_v13 }
 0x4b5   : > { %759 = vmatprep.subr.bf16.mxu0 %v826_v0 }
 0x4b9   : > { %v813_v14 = vpop.eup %812 }
 0x4ba   : > { %v339_v15 = vmul.f32 %v813_v14, %v807_v61 }
 0x4bc   : > { %v340_v16 = vpack.c.bf16 %v339_v15, %v339_v15 }
 0x4be   : > { %750 = vmatmul.mubr.msk.bf16.vlgmr.msra.gmra.mrb[4].mxu0 %vm161_vm1, %v340_v16  ;;  %v561_v17 = vpop.xlane.xlu0 %560 }
 0x4bf   : > { %761 = vmatprep.mubr.msk.bf16.mxu0 %vm827_vm0, %v826_v0 }
 0x4c2   : > { %v454_v18 = vpop.permute.xlu0 %453 }
 0x4c3   : > { %v459_v2 = vsel %vm233_vm2, %v454_v18, 0 }
 0x4c4   : > { %760 = vmatpush3.bf16.msra.mxu0 %v459_v2 }
 0x4c5   : > { %771 = vmatprep.subr.bf16.mxu0 %v826_v0 }
 0x4e3   : > { %v449_v19 = vpop.xlane.xlu1 %448 }
 0x4e4   : > { %814 = vrcp.f32 %v449_v19 }
 0x4e5   : > { %816 = vrcp.f32 %v561_v17 }
 0x4e7   : > { %v566_v21 = vpop.permute.xlu1 %565 }
 0x4e8   : > { %v571_v23 = vsel %vm233_vm2, %v566_v21, 0 }
 0x4ee   : > { %v815_v20 = vpop.eup %814 }
 0x4ef   : > { %v451_v22 = vmul.f32 %v815_v20, %v811_v9  ;;  %v817_v25 = vpop.eup %816 }
 0x4f0   : > { %v563_v26 = vmul.f32 %v817_v25, %v809_v4 }
 0x4f1   : > { %v452_v24 = vpack.c.bf16 %v451_v22, %v451_v22 }
 0x4f2   : > { %v564_v27 = vpack.c.bf16 %v563_v26, %v563_v26 }
 0x4f3   : > { %762 = vmatmul.mubr.msk.bf16.vlgmr.msra.gmra.mrb[8].mxu0 %vm161_vm1, %v452_v24 }
 0x4f4   : > { %772 = vmatpush3.bf16.msra.mxu0 %v571_v23  ;;  %773 = vmatprep.mubr.msk.bf16.mxu0 %vm827_vm0, %v826_v0 }
 0x4fb   : > { %774 = vmatmul.mubr.msk.bf16.vlgmr.msra.gmra.mrb[12].mxu0 %vm161_vm1, %v564_v27 }
 0x591   : > { %v383_v28 = vpop.f32.mrb[4].mxu0 }
 0x592   : > { %614 = vrot.lane.b32.xlu1 %v383_v28, %s839_s29  ;;  %v751_v29 = vpop.f32.mrb[5].mxu0 }
 0x593   : > { %v386_v30 = vpop.f32.mrb[6].mxu0 }
 0x594   : > { %v752_v31 = vpop.f32.mrb[7].mxu0 }
 0x5c6   : > { %v495_v32 = vpop.f32.mrb[8].mxu0 }
 0x5c7   : > { %618 = vrot.lane.b32.xlu0 %v495_v32, %s840_s30  ;;  %v763_v34 = vpop.f32.mrb[9].mxu0 }
 0x5c8   : > { %v498_v35 = vpop.f32.mrb[10].mxu0 }
 0x5c9   : > { %v764_v36 = vpop.f32.mrb[11].mxu0 }
 0x5ce   : > { %v607_v37 = vpop.f32.mrb[12].mxu0 }
 0x5cf   : > { %622 = vrot.lane.b32.xlu1 %v607_v37, %s841_s3  ;;  %v775_v0 = vpop.f32.mrb[13].mxu0 }
 0x5d0   : > { %v610_v38 = vpop.f32.mrb[14].mxu0 }
 0x5d1   : > { %v776_v39 = vpop.f32.mrb[15].mxu0 }
 0x604   : > { %v615_v40 = vpop.permute.xlu1 %614 }
 0x605   : > { %v625_v42 = vsel %vm161_vm1, %v918_v33, %v615_v40 }
 0x639   : > { %v619_v41 = vpop.permute.xlu0 %618 }
 0x63a   : > { %v627_v43 = vsel %vm626_vm3, %v625_v42, %v619_v41 }
 0x641   : > { %v623_v44 = vpop.permute.xlu1 %622 }
 0x642   : > { %v629_v45 = vsel %vm628_vm4, %v627_v43, %v623_v44 }
 0x643   : > { %631 = vst.msk [vmem:[%s152_s7] sm:$0xff] %vm630_vm5, %v629_v45 }
 0x644 PF: > { %s12_s9 = sadd.s32 1, %s824_s9  }
 0x645   : > { %p9_p4 = scmp.ge.s32.totalorder %s12_s9, 4  }
 0x647   :  { %11 = sbr.rel (!%p9_p4) target bundleno = 1 (0x1), region = 61 }

// kernel: smiles_bert_forward.19
= control target key start
LH: loop header
LB: loop body
LE: loop exit
PB: predicated region body
PF: predicated region fallthrough
CT: control target
= control target key end

     0   :  { %vm23_vm0 = vcmask 261120   ;;  %s136_s0 = inlined_call_operand.vmem [shape: f32[16,32], index: 0, kind: input, shape index: {}]   ;;  %s137_s1 = inlined_call_operand.vmem [shape: f32[16,32], index: 1, kind: input, shape index: {}]   ;;  %s138_s2 = inlined_call_operand.vmem [shape: f32[1,32], index: 2, kind: input, shape index: {}]   ;;  %s139_s3 = inlined_call_operand.vmem [shape: f32[1,32], index: 3, kind: input, shape index: {}]   ;;  %s140_s4 = inlined_call_operand.vmem [shape: f32[16,32], index: 4, kind: output, shape index: {}]  }
   0x1   :  { %v17_v0 = vld [vmem:[%s136_s0] sm:$0xff]  ;;  %v18_v2 = vld [vmem:[%s136_s0 + $0x8] sm:$0xff] }
   0x2   :  { %v19_v1 = vld [vmem:[%s137_s1] sm:$0xff]  ;;  %v20_v4 = vld [vmem:[%s137_s1 + $0x8] sm:$0xff] }
   0x3   :  { %v21_v3 = vadd.f32 %v19_v1, %v17_v0  ;;  %v22_v5 = vadd.f32 %v20_v4, %v18_v2  ;;  %v75_v25 = vld [vmem:[%s138_s2] ss:$0 sm:$0xff] }
   0x4   :  { %v76_v27 = vld [vmem:[%s139_s3] ss:$0 sm:$0xff] }
   0x5   :  { %v24_v6 = vsel %vm23_vm0, %v21_v3, 0.0  ;;  %v27_v7 = vsel %vm23_vm0, %v22_v5, 0.0 }
   0x6   :  { %25 = vadd.xlane.f32.xlu0 %v24_v6 }
   0xa   :  { %28 = vadd.xlane.f32.xlu0 %v27_v7 }
  0x93   :  { %v26_v8 = vpop.xlane.xlu0 %25 }
  0x94   :  { %v31_v9 = vmul.f32 0.03125, %v26_v8 }
  0x96   :  { %v33_v10 = vsub.f32 %v21_v3, %v31_v9 }
  0x97   :  { %v29_v11 = vpop.xlane.xlu0 %28 }
  0x98   :  { %v32_v12 = vmul.f32 0.03125, %v29_v11  ;;  %v35_v13 = vmul.f32 %v33_v10, %v33_v10 }
  0x9a   :  { %v34_v14 = vsub.f32 %v22_v5, %v32_v12  ;;  %v37_v15 = vsel %vm23_vm0, %v35_v13, 0.0 }
  0x9b   :  { %38 = vadd.xlane.f32.xlu1 %v37_v15 }
  0x9c   :  { %v36_v16 = vmul.f32 %v34_v14, %v34_v14 }
  0x9e   :  { %v40_v17 = vsel %vm23_vm0, %v36_v16, 0.0 }
  0x9f   :  { %41 = vadd.xlane.f32.xlu1 %v40_v17 }
 0x128   :  { %v39_v18 = vpop.xlane.xlu1 %38 }
 0x129   :  { %v43_v19 = vmul.f32 0.03125, %v39_v18 }
 0x12b   :  { %v45_v20 = vadd.f32 1e-05, %v43_v19 }
 0x12c   :  { %v42_v21 = vpop.xlane.xlu1 %41 }
 0x12d   :  { %77 = vrsqrt.f32 %v45_v20  ;;  %v44_v22 = vmul.f32 0.03125, %v42_v21 }
 0x12f   :  { %v46_v23 = vadd.f32 1e-05, %v44_v22 }
 0x131   :  { %79 = vrsqrt.f32 %v46_v23 }
 0x137   :  { %v78_v24 = vpop.eup %77 }
 0x138   :  { %v49_v26 = vmul.f32 %v78_v24, %v33_v10 }
 0x13a   :  { %v58_v28 = vmul.f32 %v75_v25, %v49_v26 }
 0x13b   :  { %v80_v29 = vpop.eup %79 }
 0x13c   :  { %v67_v30 = vadd.f32 %v76_v27, %v58_v28  ;;  %v50_v31 = vmul.f32 %v80_v29, %v34_v14 }
 0x13e   :  { %69 = vst.msk [vmem:[%s140_s4] sm:$0xff] %vm23_vm0, %v67_v30  ;;  %v59_v32 = vmul.f32 %v75_v25, %v50_v31 }
 0x140   :  { %v68_v33 = vadd.f32 %v76_v27, %v59_v32 }
 0x142   :  { %70 = vst.msk [vmem:[%s140_s4 + $0x8] sm:$0xff] %vm23_vm0, %v68_v33 }

// kernel: smiles_bert_forward.20
= control target key start
LH: loop header
LB: loop body
LE: loop exit
PB: predicated region body
PF: predicated region fallthrough
CT: control target
= control target key end

     0   :  { %v144_v0 = vmov 0.0   ;;  %vm145_vm0 = vmmov 0   ;;  %vm45_vm1 = vcmask 261120   ;;  %vm108_vm2 = vcmask 519168   ;;  %s184_s1 = inlined_call_operand.vmem [shape: bf16[32,64], index: 1, kind: input, shape index: {}]   ;;  %s185_s0 = inlined_call_operand.vmem [shape: bf16[16,32], index: 0, kind: input, shape index: {}]   ;;  %s186_s2 = inlined_call_operand.vmem [shape: f32[1,64], index: 2, kind: input, shape index: {}]   ;;  %s187_s3 = inlined_call_operand.vmem [shape: bf16[16,64], index: 3, kind: output, shape index: {}]  }
   0x1   :  { %127 = vmatprep.subr.bf16.mxu0 %v144_v0  ;;  %v137_v1 = vld [vmem:[%s184_s1] sm:$0xff]   ;;  %131 = vmatprep.mubr.msk.bf16.mxu0 %vm145_vm0, %v144_v0  ;;  %v138_v2 = vld [vmem:[%s184_s1 + $0x8] sm:$0xff]  }
   0x2   :  { %128 = vmatpush3.bf16.msra.mxu0 %v137_v1  ;;  %v139_v3 = vld [vmem:[%s185_s0] sm:$0xff]  }
   0x3   :  { %129 = vmatprep.subr.bf16.mxu0 %v144_v0  ;;  %v115_v4 = vld [vmem:[%s186_s2] ss:$0 sm:$0xff] }
   0x6   :  { %130 = vmatpush3.bf16.msra.mxu0 %v138_v2 }
   0x9   :  { %132 = vmatmul.mubr.msk.bf16.vlgmr.msra.gmra.mrb[0].mxu0 %vm45_vm1, %v139_v3 }
  0xdc   :  { %v83_v5 = vpop.f32.mrb[0].mxu0 }
  0xdd   :  { %v84_v6 = vadd.f32 %v115_v4, %v83_v5  ;;  %v133_v7 = vpop.f32.mrb[1].mxu0 }
  0xde   :  { %v86_v8 = vpop.f32.mrb[2].mxu0 }
  0xdf   :  { %v92_v9 = vmul.f32 0.70710677, %v84_v6  ;;  %v87_v10 = vadd.f32 %v115_v4, %v86_v8  ;;  %v134_v11 = vpop.f32.mrb[3].mxu0  ;;  %v90_v14 = vmul.f32 0.5, %v84_v6 }
  0xe1   :  { %140 = verf.f32 %v92_v9  ;;  %v93_v12 = vmul.f32 0.70710677, %v87_v10  ;;  %v91_v18 = vmul.f32 0.5, %v87_v10 }
  0xe3   :  { %142 = verf.f32 %v93_v12 }
  0xeb   :  { %v141_v13 = vpop.eup %140 }
  0xec   :  { %v96_v15 = vadd.f32 1.0, %v141_v13 }
  0xed   :  { %v143_v16 = vpop.eup %142 }
  0xee   :  { %v98_v17 = vmul.f32 %v96_v15, %v90_v14  ;;  %v97_v19 = vadd.f32 1.0, %v143_v16 }
  0xf0   :  { %v122_v20 = vpack.c.bf16 %v98_v17, %v98_v17  ;;  %v99_v21 = vmul.f32 %v97_v19, %v91_v18 }
  0xf2   :  { %109 = vst.msk [vmem:[%s187_s3] sm:$0xf] %vm108_vm2, %v122_v20  ;;  %v123_v22 = vpack.c.bf16 %v99_v21, %v99_v21 }
  0xf4   :  { %110 = vst.msk [vmem:[%s187_s3 + $0x4] sm:$0xf] %vm108_vm2, %v123_v22 }

// kernel: smiles_bert_forward.21
= control target key start
LH: loop header
LB: loop body
LE: loop exit
PB: predicated region body
PF: predicated region fallthrough
CT: control target
= control target key end

     0   :  { %v144_v0 = vmov 0.0   ;;  %vm145_vm0 = vmmov 0   ;;  %vm61_vm1 = vcmask 523264   ;;  %vm106_vm2 = vcmask 261120   ;;  %s190_s1 = inlined_call_operand.vmem [shape: bf16[64,32], index: 1, kind: input, shape index: {}]   ;;  %s191_s0 = inlined_call_operand.vmem [shape: bf16[16,64], index: 0, kind: input, shape index: {}]   ;;  %s192_s2 = inlined_call_operand.vmem [shape: f32[1,32], index: 2, kind: input, shape index: {}]   ;;  %s193_s3 = inlined_call_operand.vmem [shape: f32[16,32], index: 3, kind: output, shape index: {}]  }
   0x1   :  { %125 = vmatprep.subr.bf16.mxu0 %v144_v0  ;;  %v139_v1 = vld [vmem:[%s190_s1] sm:$0xff]   ;;  %133 = vmatprep.mubr.msk.bf16.mxu0 %vm145_vm0, %v144_v0  ;;  %v140_v2 = vld [vmem:[%s190_s1 + $0x8] sm:$0xff]   ;;  %v141_v3 = vld [vmem:[%s190_s1 + $0x10] sm:$0xff]  }
   0x2   :  { %126 = vmatpush3.bf16.msra.mxu0 %v139_v1  ;;  %v142_v4 = vld [vmem:[%s190_s1 + $0x18] sm:$0xff]   ;;  %v143_v5 = vld [vmem:[%s191_s0] sm:$0xff]  }
   0x3   :  { %127 = vmatprep.subr.bf16.mxu0 %v144_v0  ;;  %v113_v6 = vld [vmem:[%s192_s2] ss:$0 sm:$0xff] }
   0x6   :  { %128 = vmatpush3.bf16.msra.mxu0 %v140_v2 }
   0x7   :  { %129 = vmatprep.subr.bf16.mxu0 %v144_v0 }
   0xa   :  { %130 = vmatpush3.bf16.msra.mxu0 %v141_v3 }
   0xb   :  { %131 = vmatprep.subr.bf16.mxu0 %v144_v0 }
   0xe   :  { %132 = vmatpush3.bf16.msra.mxu0 %v142_v4 }
  0x11   :  { %134 = vmatmul.mubr.msk.bf16.vlgmr.msra.gmra.mrb[0].mxu0 %vm61_vm1, %v143_v5 }
  0xe4   :  { %v99_v7 = vpop.f32.mrb[0].mxu0 }
  0xe5   :  { %v100_v8 = vadd.f32 %v113_v6, %v99_v7  ;;  %v135_v9 = vpop.f32.mrb[1].mxu0 }
  0xe6   :  { %v102_v10 = vpop.f32.mrb[2].mxu0 }
  0xe7   :  { %107 = vst.msk [vmem:[%s193_s3] sm:$0xff] %vm106_vm2, %v100_v8  ;;  %v103_v11 = vadd.f32 %v113_v6, %v102_v10  ;;  %v136_v12 = vpop.f32.mrb[3].mxu0 }
  0xe9   :  { %108 = vst.msk [vmem:[%s193_s3 + $0x8] sm:$0xff] %vm106_vm2, %v103_v11 }

// kernel: smiles_bert_forward.29
= control target key start
LH: loop header
LB: loop body
LE: loop exit
PB: predicated region body
PF: predicated region fallthrough
CT: control target
= control target key end

     0   :  { %vm24_vm0 = vcmask 261120   ;;  %s185_s0 = inlined_call_operand.vmem [shape: f32[16,32], index: 0, kind: input, shape index: {}]   ;;  %s186_s1 = inlined_call_operand.vmem [shape: f32[16,32], index: 1, kind: input, shape index: {}]   ;;  %s187_s2 = inlined_call_operand.vmem [shape: f32[1,32], index: 2, kind: input, shape index: {}]   ;;  %s188_s3 = inlined_call_operand.vmem [shape: f32[1,32], index: 3, kind: input, shape index: {}]   ;;  %s189_s4 = inlined_call_operand.hbm [shape: f32[16,32], index: 4, kind: output, shape index: {}]  }
   0x1   :  { %v18_v0 = vld [vmem:[%s185_s0] sm:$0xff]  ;;  %v19_v2 = vld [vmem:[%s185_s0 + $0x8] sm:$0xff] }
   0x2   :  { %v20_v1 = vld [vmem:[%s186_s1] sm:$0xff]  ;;  %v21_v4 = vld [vmem:[%s186_s1 + $0x8] sm:$0xff] }
   0x3   :  { %v22_v3 = vadd.f32 %v20_v1, %v18_v0 }
   0x4   :  { %9 = vsyncpa [#allocation3], 0  ;;  %v23_v5 = vadd.f32 %v21_v4, %v19_v2  ;;  %v88_v25 = vld [vmem:[%s187_s2] ss:$0 sm:$0xff]  ;;  %s121_s25 = smov [#allocation2]  }
   0x5   :  { %v25_v6 = vsel %vm24_vm0, %v22_v3, 0.0  ;;  %v89_v27 = vld [vmem:[%s188_s3] ss:$0 sm:$0xff]  ;;  %s77_s26 = sshll.u32 %s121_s25, 4  ;;  %s78_s26 = int_to_ptr.vmem [resolvable:$true] %s77_s26 }
   0x6   :  { %26 = vadd.xlane.f32.xlu0 %v25_v6  ;;  %v28_v7 = vsel %vm24_vm0, %v23_v5, 0.0  ;;  %s97_s27 = scalar_lea.vmem %s78_s26, 256  ;;  %p102_p1 = scmp.lt.s32.totalorder %s78_s26, %s78_s26 }
   0x7   :  { %p98_p0 = scmp.ne.s32.totalorder %s78_s26, %s97_s27  ;;  %p103_p2 = scmp.lt.s32.totalorder %s97_s27, %s97_s27 }
   0x9   :  { %p104_p3 = por %p103_p2, %p102_p1 }
   0xa   :  { %29 = vadd.xlane.f32.xlu0 %v28_v7 }
   0xb   :  { %p105_p4 = pnand %p104_p3, %p98_p0 }
  0x93   :  { %v27_v8 = vpop.xlane.xlu0 %26 }
  0x94   :  { %v32_v9 = vmul.f32 0.03125, %v27_v8 }
  0x96   :  { %v34_v10 = vsub.f32 %v22_v3, %v32_v9 }
  0x97   :  { %v30_v11 = vpop.xlane.xlu0 %29 }
  0x98   :  { %v33_v12 = vmul.f32 0.03125, %v30_v11  ;;  %v36_v13 = vmul.f32 %v34_v10, %v34_v10 }
  0x9a   :  { %v35_v14 = vsub.f32 %v23_v5, %v33_v12  ;;  %v38_v15 = vsel %vm24_vm0, %v36_v13, 0.0 }
  0x9b   :  { %39 = vadd.xlane.f32.xlu1 %v38_v15 }
  0x9c   :  { %v37_v16 = vmul.f32 %v35_v14, %v35_v14 }
  0x9e   :  { %v41_v17 = vsel %vm24_vm0, %v37_v16, 0.0 }
  0x9f   :  { %42 = vadd.xlane.f32.xlu1 %v41_v17 }
 0x128   :  { %v40_v18 = vpop.xlane.xlu1 %39 }
 0x129   :  { %v44_v19 = vmul.f32 0.03125, %v40_v18 }
 0x12b   :  { %v46_v20 = vadd.f32 1e-05, %v44_v19 }
 0x12c   :  { %v43_v21 = vpop.xlane.xlu1 %42 }
 0x12d   :  { %93 = vrsqrt.f32 %v46_v20  ;;  %v45_v22 = vmul.f32 0.03125, %v43_v21 }
 0x12f   :  { %v47_v23 = vadd.f32 1e-05, %v45_v22 }
 0x131   :  { %95 = vrsqrt.f32 %v47_v23 }
 0x137   :  { %v94_v24 = vpop.eup %93 }
 0x138   :  { %v50_v26 = vmul.f32 %v94_v24, %v34_v10 }
 0x13a   :  { %v59_v28 = vmul.f32 %v88_v25, %v50_v26 }
 0x13b   :  { %v96_v29 = vpop.eup %95 }
 0x13c   :  { %v51_v30 = vmul.f32 %v96_v29, %v35_v14  ;;  %v68_v31 = vadd.f32 %v89_v27, %v59_v28 }
 0x13e   :  { %v60_v32 = vmul.f32 %v88_v25, %v51_v30  ;;  %70 = vst.msk [vmem:[#allocation2] sm:$0xff] %vm24_vm0, %v68_v31 }
 0x140   :  { %v69_v33 = vadd.f32 %v89_v27, %v60_v32 }
 0x142   :  { %71 = vst.msk [vmem:[#allocation2 + $0x8] sm:$0xff] %vm24_vm0, %v69_v33 }
 0x143   :  { %108 = shalt.err (!%p105_p4)
}
 0x144   :  { %s109_s28 = scalar_lea.hbm %s189_s4, 256 }
 0x145   :  { %p110_p5 = scmp.ne.s32.totalorder %s189_s4, %s109_s28  ;;  %p113_p6 = scmp.lt.u32.totalorder %s109_s28, %s189_s4 }
 0x147   :  { %p115_p7 = pnand %p113_p6, %p110_p5 }
 0x149   :  { %118 = shalt.err (!%p115_p7)
}
 0x14a   :  { %s122_s7 = smov 128   ;;  %s123_s8 = smov 8  }
 0x14b   :  { %83 = dma.vmem_to_hbm [thread:$0]  %s78_s26, 256, %s189_s4, [#allocation3], %s122_s7, %s122_s7, %s123_s8  }
 0x14c   :  { %119 = dma.done.wait [#allocation3], 256  }
 0x14d   :  { %120 = vsyncadd [#allocation3], 4294967040 }
 0x14e   :  { %87 = vsyncpa [#allocation3], 1 }

</bundles_post_ra>
